<compile_context>
chip_gen: v6e
topology: v6e:2x2x1
jax: 0.10.0
libtpu: 0.0.40
codegen_flags: <defaults>
</compile_context>

<pallas_src>
import jax
import jax.numpy as jnp
import numpy as np
from jax import lax
from jax.experimental import pallas as pl
from jax.experimental.pallas import tpu as pltpu

# ---- small synthetic shapes consistent with the module ----
B = 2                      # image batch
C, H, W = 3, 16, 16        # NCHW image
EMBED = 64                 # CLIP joint embed_dim (text_projection.shape[1])
CTX_DIM = 32               # ln_final width (ctx_dim)
N_CTX = 4                  # "a photo of a"
N_CLS = 3                  # number of classnames
SEQ_LEN = 16               # tokenized prompt length (77 in real CLIP)
HIDDEN = EMBED // 16       # meta_net hidden width
SUF_LEN = SEQ_LEN - 1 - N_CTX
X_DIM = C * H * W          # flattened image dim (768, already /128)

# ---- TPU-friendly padded shapes: lanes -> 128, rows -> multiple of 8 ----
LANE = 128
B_PAD = 8                  # batch rows padded to a full sublane group
CLS_PAD = LANE             # classes padded so the logits tile is lane-dense
CTX_ROWS_PAD = 8           # N_CTX rows padded to a sublane multiple

_VMEM = pl.BlockSpec(memory_space=pltpu.MemorySpace.VMEM)


# --------------------------- single fused kernel ---------------------------
def _fused_cocoop_kernel(x_ref, wimg_ref, w1_ref, w2_ref, ctx_ref,
                         eot_ref, proj_ref, slab_ref,
                         logits_ref, ctxs_ref):
    # parameter slab rows: 0=b_img 1=b1 2=b2 3=ln_gamma 4=ln_beta 5=logit_scale
    slab = slab_ref[...]
    b_img = slab[0:1, :]
    b1 = slab[1:2, :]
    b2 = slab[2:3, :]
    gamma = slab[3:4, :]
    beta = slab[4:5, :]
    scale = jnp.exp(slab[5:6, :])                       # logit_scale.exp()

    # 1) image "encoder" matmul + L2 row-normalization -> image_features
    feats = jnp.dot(x_ref[...], wimg_ref[...],
                    preferred_element_type=jnp.float32) + b_img
    imf = feats * lax.rsqrt(
        jnp.sum(feats * feats, axis=-1, keepdims=True) + 1e-12)

    # 2) meta_net MLP (Linear->ReLU->Linear) + ctx broadcast add -> ctx_shifted
    h = jnp.maximum(
        jnp.dot(imf, w1_ref[...], preferred_element_type=jnp.float32) + b1,
        0.0)
    meta_bias = jnp.dot(h, w2_ref[...],
                        preferred_element_type=jnp.float32) + b2
    # ctx.unsqueeze(0) + bias.unsqueeze(1)
    ctxs_ref[...] = ctx_ref[...][None, :, :] + meta_bias[:, None, :]

    # 3) text readout: LayerNorm(ln_final) on EOT embedding + text_projection
    #    (statistics use the real CTX_DIM; padded lanes of eot are zero)
    x = eot_ref[...]
    mu = jnp.sum(x, axis=-1, keepdims=True) * (1.0 / CTX_DIM)
    var = jnp.sum(x * x, axis=-1, keepdims=True) * (1.0 / CTX_DIM) - mu * mu
    xn = (x - mu) * lax.rsqrt(var + 1e-5) * gamma + beta
    tf = jnp.dot(xn, proj_ref[...], preferred_element_type=jnp.float32)
    tf = tf * lax.rsqrt(jnp.sum(tf * tf, axis=-1, keepdims=True) + 1e-12)

    # 4) logits = logit_scale * imf @ text_features.T   (MXU NT-contraction,
    #    lane-dense (B_PAD, CLS_PAD) output tile)
    logits = lax.dot_general(imf, tf, (((1,), (1,)), ((), ())),
                             preferred_element_type=jnp.float32)
    logits_ref[...] = scale * logits


# ------------------------------- glue helpers -------------------------------
def _pad2d(a, rows, cols):
    return jnp.pad(a, ((0, rows - a.shape[0]), (0, cols - a.shape[1])))


def prepare_padded_params(p):
    """One-time parameter setup: pad everything to (8,128)-aligned shapes,
    gather the EOT embeddings, and fold tiny params into a single slab."""
    pp = {
        "w_img": _pad2d(p["w_img"], X_DIM, LANE),          # (768, 128)
        "w1": _pad2d(p["w1"], LANE, LANE),                 # (128, 128)
        "w2": _pad2d(p["w2"], LANE, LANE),                 # (128, 128)
        "ctx": _pad2d(p["ctx"], CTX_ROWS_PAD, LANE),       # (8, 128)
        "text_proj": _pad2d(p["text_proj"], LANE, LANE),   # (128, 128)
    }

    # construct_prompts() + EOT gather, without materializing the full
    # (B, N_CLS, SEQ_LEN, CTX_DIM) prompts tensor: for this prompt structure
    # eot_idx = 1 + n_ctx + name_len + 1 always points into token_suffix.
    suf_idx = p["eot_idx"] - 1 - N_CTX
    eot = p["token_suffix"][jnp.arange(N_CLS), suf_idx, :]  # (N_CLS, CTX_DIM)
    pp["eot"] = _pad2d(eot, CLS_PAD, LANE)                  # (128, 128)

    # fold b_img / b1 / b2 / ln_gamma / ln_beta / logit_scale into one slab
    slab = jnp.zeros((8, LANE), jnp.float32)
    slab = slab.at[0, :EMBED].set(p["b_img"].reshape(-1))
    slab = slab.at[1, :HIDDEN].set(p["b1"].reshape(-1))
    slab = slab.at[2, :CTX_DIM].set(p["b2"].reshape(-1))
    slab = slab.at[3, :CTX_DIM].set(p["ln_gamma"].reshape(-1))
    slab = slab.at[4, :CTX_DIM].set(p["ln_beta"].reshape(-1))
    slab = slab.at[5, :].set(p["logit_scale"])
    pp["slab"] = slab
    return pp


def cocoop_clip_forward(image, pp):
    x_flat = image.reshape(image.shape[0], -1)              # NCHW -> (B, C*H*W)
    x_pad = jnp.pad(x_flat, ((0, B_PAD - B), (0, 0)))        # sublane-pad batch

    logits_pad, _ctx_shifted_pad = pl.pallas_call(
        _fused_cocoop_kernel,
        out_shape=(
            jax.ShapeDtypeStruct((B_PAD, CLS_PAD), jnp.float32),
            jax.ShapeDtypeStruct((B_PAD, CTX_ROWS_PAD, LANE), jnp.float32),
        ),
        in_specs=[_VMEM] * 8,
        out_specs=(_VMEM, _VMEM),
    )(x_pad, pp["w_img"], pp["w1"], pp["w2"], pp["ctx"],
      pp["eot"], pp["text_proj"], pp["slab"])

    return logits_pad[:B, :N_CLS]                            # (B, N_CLS)


# ------------------------------ pure-JAX reference ------------------------------
def reference_forward(image, p):
    x_flat = image.reshape(image.shape[0], -1)
    feats = x_flat @ p["w_img"] + p["b_img"]
    imf = feats / jnp.linalg.norm(feats, axis=-1, keepdims=True)
    h = jnp.maximum(imf @ p["w1"] + p["b1"], 0.0)
    bias = h @ p["w2"] + p["b2"]
    ctx_shifted = p["ctx"][None] + bias[:, None, :]
    pre = jnp.broadcast_to(p["token_prefix"][None], (B, N_CLS, 1, CTX_DIM))
    suf = jnp.broadcast_to(p["token_suffix"][None], (B, N_CLS, SUF_LEN, CTX_DIM))
    ctx_b = jnp.broadcast_to(ctx_shifted[:, None], (B, N_CLS, N_CTX, CTX_DIM))
    prompts = jnp.concatenate([pre, ctx_b, suf], axis=2)
    eot = prompts[:, jnp.arange(N_CLS), p["eot_idx"], :]
    mu = jnp.mean(eot, axis=-1, keepdims=True)
    var = jnp.mean((eot - mu) ** 2, axis=-1, keepdims=True)
    xn = (eot - mu) / jnp.sqrt(var + 1e-5) * p["ln_gamma"] + p["ln_beta"]
    tf = xn.reshape(B * N_CLS, CTX_DIM) @ p["text_proj"]
    tf = tf / jnp.linalg.norm(tf, axis=-1, keepdims=True)
    tf = tf.reshape(B, N_CLS, EMBED)
    scale = jnp.exp(p["logit_scale"])
    return scale * jnp.einsum("be,bce->bc", imf, tf)


# ------------------------------------ main ------------------------------------
if __name__ == "__main__":
    key = jax.random.PRNGKey(0)
    ks = jax.random.split(key, 10)

    image = jax.random.normal(ks[0], (B, C, H, W), jnp.float32)       # NCHW

    name_lens = [1, 2, 3]  # synthetic per-class name token lengths
    params = {
        # stand-in image encoder (TODO(synk): ViT backbone not translated)
        "w_img": jax.random.normal(ks[1], (C * H * W, EMBED), jnp.float32) * 0.02,
        "b_img": jax.random.normal(ks[2], (1, EMBED), jnp.float32) * 0.02,
        # CoCoOpPromptLearner parameters / buffers
        "ctx": jax.random.normal(ks[3], (N_CTX, CTX_DIM), jnp.float32) * 0.02,
        "w1": jax.random.normal(ks[4], (EMBED, HIDDEN), jnp.float32) * 0.02,
        "b1": jnp.zeros((1, HIDDEN), jnp.float32),
        "w2": jax.random.normal(ks[5], (HIDDEN, CTX_DIM), jnp.float32) * 0.02,
        "b2": jnp.zeros((1, CTX_DIM), jnp.float32),
        "token_prefix": jax.random.normal(ks[6], (N_CLS, 1, CTX_DIM), jnp.float32) * 0.02,
        "token_suffix": jax.random.normal(ks[7], (N_CLS, SUF_LEN, CTX_DIM), jnp.float32) * 0.02,
        # text readout (ln_final + text_projection) of the text encoder
        "ln_gamma": jnp.ones((1, CTX_DIM), jnp.float32),
        "ln_beta": jnp.zeros((1, CTX_DIM), jnp.float32),
        "text_proj": jax.random.normal(ks[8], (CTX_DIM, EMBED), jnp.float32) * (CTX_DIM ** -0.5),
        # CLIP logit_scale parameter (log(1/0.07)); .exp() applied in kernel
        "logit_scale": jnp.asarray(np.log(1.0 / 0.07), jnp.float32),
        # EOT token index per class: [SOT, ctx*n_ctx, name tokens, '.', EOT]
        "eot_idx": jnp.asarray([1 + N_CTX + nl + 1 for nl in name_lens], jnp.int32),
    }

    padded = prepare_padded_params(params)           # one-time layout plumbing
    fwd = jax.jit(cocoop_clip_forward)
    logits = jax.block_until_ready(fwd(image, padded))

    ref = reference_forward(image, params)
    assert logits.shape == (B, N_CLS)
    np.testing.assert_allclose(np.asarray(logits), np.asarray(ref),
                               rtol=1e-4, atol=1e-4)
    print("KERNEL_OK")
</pallas_src>

<mosaic_0001>
module attributes {stable_mosaic.version = 11 : i64} {
  func.func @_fused_cocoop_kernel(%arg0: memref<8x768xf32, #tpu.memory_space<vmem>>, %arg1: memref<768x128xf32, #tpu.memory_space<vmem>>, %arg2: memref<128x128xf32, #tpu.memory_space<vmem>>, %arg3: memref<128x128xf32, #tpu.memory_space<vmem>>, %arg4: memref<8x128xf32, #tpu.memory_space<vmem>>, %arg5: memref<128x128xf32, #tpu.memory_space<vmem>>, %arg6: memref<128x128xf32, #tpu.memory_space<vmem>>, %arg7: memref<8x128xf32, #tpu.memory_space<vmem>>, %arg8: memref<8x128xf32, #tpu.memory_space<vmem>>, %arg9: memref<8x8x128xf32, #tpu.memory_space<vmem>>) attributes {dimension_semantics = [], scalar_prefetch = 0 : i64, scratch_operands = 0 : i64, tpu.core_type = #tpu.core_type<tc>} {
    %c0 = arith.constant 0 : index
    %c0_0 = arith.constant 0 : index
    %0 = vector.load %arg7[%c0, %c0_0] : memref<8x128xf32, #tpu.memory_space<vmem>>, vector<8x128xf32>
    %1 = vector.extract_strided_slice %0 {offsets = [0, 0], sizes = [1, 128], strides = [1, 1]} : vector<8x128xf32> to vector<1x128xf32>
    %2 = vector.extract_strided_slice %0 {offsets = [1, 0], sizes = [1, 128], strides = [1, 1]} : vector<8x128xf32> to vector<1x128xf32>
    %3 = vector.extract_strided_slice %0 {offsets = [2, 0], sizes = [1, 128], strides = [1, 1]} : vector<8x128xf32> to vector<1x128xf32>
    %4 = vector.extract_strided_slice %0 {offsets = [3, 0], sizes = [1, 128], strides = [1, 1]} : vector<8x128xf32> to vector<1x128xf32>
    %5 = vector.extract_strided_slice %0 {offsets = [4, 0], sizes = [1, 128], strides = [1, 1]} : vector<8x128xf32> to vector<1x128xf32>
    %6 = vector.extract_strided_slice %0 {offsets = [5, 0], sizes = [1, 128], strides = [1, 1]} : vector<8x128xf32> to vector<1x128xf32>
    %7 = math.exp %6 : vector<1x128xf32>
    %c0_1 = arith.constant 0 : index
    %c0_2 = arith.constant 0 : index
    %8 = vector.load %arg0[%c0_1, %c0_2] : memref<8x768xf32, #tpu.memory_space<vmem>>, vector<8x768xf32>
    %c0_3 = arith.constant 0 : index
    %c0_4 = arith.constant 0 : index
    %9 = vector.load %arg1[%c0_3, %c0_4] : memref<768x128xf32, #tpu.memory_space<vmem>>, vector<768x128xf32>
    %cst = arith.constant dense<0.000000e+00> : vector<8x128xf32>
    %10 = tpu.matmul %8, %9, %cst {dimension_numbers = #tpu.dot_dimension_numbers<[1], [0], [0], [1], [0, 0, 1, 1], [], []>} : vector<8x768xf32>, vector<768x128xf32>, vector<8x128xf32> -> vector<8x128xf32>
    %11 = vector.broadcast %1 : vector<1x128xf32> to vector<8x128xf32>
    %12 = arith.addf %10, %11 : vector<8x128xf32>
    %13 = arith.mulf %12, %12 : vector<8x128xf32>
    %cst_5 = arith.constant dense<0.000000e+00> : vector<8xf32>
    %14 = vector.multi_reduction <add>, %13, %cst_5 [1] : vector<8x128xf32> to vector<8xf32>
    %15 = vector.shape_cast %14 : vector<8xf32> to vector<8x1xf32>
    %cst_6 = arith.constant 9.99999996E-13 : f32
    %16 = vector.broadcast %cst_6 : f32 to vector<8x1xf32>
    %17 = arith.addf %15, %16 : vector<8x1xf32>
    %18 = math.rsqrt %17 : vector<8x1xf32>
    %19 = vector.broadcast %18 : vector<8x1xf32> to vector<8x128xf32>
    %20 = arith.mulf %12, %19 : vector<8x128xf32>
    %c0_7 = arith.constant 0 : index
    %c0_8 = arith.constant 0 : index
    %21 = vector.load %arg2[%c0_7, %c0_8] : memref<128x128xf32, #tpu.memory_space<vmem>>, vector<128x128xf32>
    %cst_9 = arith.constant dense<0.000000e+00> : vector<8x128xf32>
    %22 = tpu.matmul %20, %21, %cst_9 {dimension_numbers = #tpu.dot_dimension_numbers<[1], [0], [0], [1], [0, 0, 1, 1], [], []>} : vector<8x128xf32>, vector<128x128xf32>, vector<8x128xf32> -> vector<8x128xf32>
    %23 = vector.broadcast %2 : vector<1x128xf32> to vector<8x128xf32>
    %24 = arith.addf %22, %23 : vector<8x128xf32>
    %cst_10 = arith.constant 0.000000e+00 : f32
    %25 = vector.broadcast %cst_10 : f32 to vector<8x128xf32>
    %26 = arith.maximumf %24, %25 : vector<8x128xf32>
    %c0_11 = arith.constant 0 : index
    %c0_12 = arith.constant 0 : index
    %27 = vector.load %arg3[%c0_11, %c0_12] : memref<128x128xf32, #tpu.memory_space<vmem>>, vector<128x128xf32>
    %cst_13 = arith.constant dense<0.000000e+00> : vector<8x128xf32>
    %28 = tpu.matmul %26, %27, %cst_13 {dimension_numbers = #tpu.dot_dimension_numbers<[1], [0], [0], [1], [0, 0, 1, 1], [], []>} : vector<8x128xf32>, vector<128x128xf32>, vector<8x128xf32> -> vector<8x128xf32>
    %29 = vector.broadcast %3 : vector<1x128xf32> to vector<8x128xf32>
    %30 = arith.addf %28, %29 : vector<8x128xf32>
    %c0_14 = arith.constant 0 : index
    %c0_15 = arith.constant 0 : index
    %31 = vector.load %arg4[%c0_14, %c0_15] : memref<8x128xf32, #tpu.memory_space<vmem>>, vector<8x128xf32>
    %32 = vector.shape_cast %31 : vector<8x128xf32> to vector<1x8x128xf32>
    %33 = vector.shape_cast %30 : vector<8x128xf32> to vector<8x1x128xf32>
    %34 = vector.broadcast %32 : vector<1x8x128xf32> to vector<8x8x128xf32>
    %35 = vector.broadcast %33 : vector<8x1x128xf32> to vector<8x8x128xf32>
    %36 = arith.addf %34, %35 : vector<8x8x128xf32>
    %c0_16 = arith.constant 0 : index
    %c0_17 = arith.constant 0 : index
    %c0_18 = arith.constant 0 : index
    %37 = vector.load %arg9[%c0_16, %c0_17, %c0_18] : memref<8x8x128xf32, #tpu.memory_space<vmem>>, vector<8x8x128xf32>
    tpu.vector_store %arg9[%c0_16, %c0_17, %c0_18], %36 {strides = array<i32>} : memref<8x8x128xf32, #tpu.memory_space<vmem>>, vector<8x8x128xf32>,
    %c0_19 = arith.constant 0 : index
    %c0_20 = arith.constant 0 : index
    %38 = vector.load %arg5[%c0_19, %c0_20] : memref<128x128xf32, #tpu.memory_space<vmem>>, vector<128x128xf32>
    %cst_21 = arith.constant dense<0.000000e+00> : vector<128xf32>
    %39 = vector.multi_reduction <add>, %38, %cst_21 [1] : vector<128x128xf32> to vector<128xf32>
    %40 = vector.shape_cast %39 : vector<128xf32> to vector<128x1xf32>
    %cst_22 = arith.constant 3.125000e-02 : f32
    %41 = vector.broadcast %cst_22 : f32 to vector<128x1xf32>
    %42 = arith.mulf %40, %41 : vector<128x1xf32>
    %43 = arith.mulf %38, %38 : vector<128x128xf32>
    %cst_23 = arith.constant dense<0.000000e+00> : vector<128xf32>
    %44 = vector.multi_reduction <add>, %43, %cst_23 [1] : vector<128x128xf32> to vector<128xf32>
    %45 = vector.shape_cast %44 : vector<128xf32> to vector<128x1xf32>
    %cst_24 = arith.constant 3.125000e-02 : f32
    %46 = vector.broadcast %cst_24 : f32 to vector<128x1xf32>
    %47 = arith.mulf %45, %46 : vector<128x1xf32>
    %48 = arith.mulf %42, %42 : vector<128x1xf32>
    %49 = arith.subf %47, %48 : vector<128x1xf32>
    %50 = vector.broadcast %42 : vector<128x1xf32> to vector<128x128xf32>
    %51 = arith.subf %38, %50 : vector<128x128xf32>
    %cst_25 = arith.constant 9.99999974E-6 : f32
    %52 = vector.broadcast %cst_25 : f32 to vector<128x1xf32>
    %53 = arith.addf %49, %52 : vector<128x1xf32>
    %54 = math.rsqrt %53 : vector<128x1xf32>
    %55 = vector.broadcast %54 : vector<128x1xf32> to vector<128x128xf32>
    %56 = arith.mulf %51, %55 : vector<128x128xf32>
    %57 = vector.broadcast %4 : vector<1x128xf32> to vector<128x128xf32>
    %58 = arith.mulf %56, %57 : vector<128x128xf32>
    %59 = vector.broadcast %5 : vector<1x128xf32> to vector<128x128xf32>
    %60 = arith.addf %58, %59 : vector<128x128xf32>
    %c0_26 = arith.constant 0 : index
    %c0_27 = arith.constant 0 : index
    %61 = vector.load %arg6[%c0_26, %c0_27] : memref<128x128xf32, #tpu.memory_space<vmem>>, vector<128x128xf32>
    %cst_28 = arith.constant dense<0.000000e+00> : vector<128x128xf32>
    %62 = tpu.matmul %60, %61, %cst_28 {dimension_numbers = #tpu.dot_dimension_numbers<[1], [0], [0], [1], [0, 0, 1, 1], [], []>} : vector<128x128xf32>, vector<128x128xf32>, vector<128x128xf32> -> vector<128x128xf32>
    %63 = arith.mulf %62, %62 : vector<128x128xf32>
    %cst_29 = arith.constant dense<0.000000e+00> : vector<128xf32>
    %64 = vector.multi_reduction <add>, %63, %cst_29 [1] : vector<128x128xf32> to vector<128xf32>
    %65 = vector.shape_cast %64 : vector<128xf32> to vector<128x1xf32>
    %cst_30 = arith.constant 9.99999996E-13 : f32
    %66 = vector.broadcast %cst_30 : f32 to vector<128x1xf32>
    %67 = arith.addf %65, %66 : vector<128x1xf32>
    %68 = math.rsqrt %67 : vector<128x1xf32>
    %69 = vector.broadcast %68 : vector<128x1xf32> to vector<128x128xf32>
    %70 = arith.mulf %62, %69 : vector<128x128xf32>
    %cst_31 = arith.constant dense<0.000000e+00> : vector<8x128xf32>
    %71 = tpu.matmul %20, %70, %cst_31 {dimension_numbers = #tpu.dot_dimension_numbers<[1], [1], [0], [0], [0, 0, 1, 0], [], []>} : vector<8x128xf32>, vector<128x128xf32>, vector<8x128xf32> -> vector<8x128xf32>
    %72 = vector.broadcast %7 : vector<1x128xf32> to vector<8x128xf32>
    %73 = arith.mulf %72, %71 : vector<8x128xf32>
    %c0_32 = arith.constant 0 : index
    %c0_33 = arith.constant 0 : index
    %74 = vector.load %arg8[%c0_32, %c0_33] : memref<8x128xf32, #tpu.memory_space<vmem>>, vector<8x128xf32>
    tpu.vector_store %arg8[%c0_32, %c0_33], %73 {strides = array<i32>} : memref<8x128xf32, #tpu.memory_space<vmem>>, vector<8x128xf32>,
    return
  }
}

</mosaic_0001>

<bundles_post_ra>
// kernel: cocoop_clip_forward.1
= control target key start
LH: loop header
LB: loop body
LE: loop exit
PB: predicated region body
PF: predicated region fallthrough
CT: control target
= control target key end

     0   :  { %15 = vsyncpa [#allocation3], 0  ;;  %s2414_s0 = inlined_call_operand.vmem [shape: f32[8,768], index: 0, kind: input, shape index: {}]   ;;  %s2415_s1 = inlined_call_operand.hbm [shape: f32[768,128], index: 1, kind: input, shape index: {}]   ;;  %s2416_s2 = inlined_call_operand.vmem [shape: f32[128,128], index: 2, kind: input, shape index: {}]   ;;  %s2417_s3 = inlined_call_operand.hbm [shape: f32[128,128], index: 3, kind: input, shape index: {}]   ;;  %s2418_s4 = inlined_call_operand.vmem [shape: f32[8,128], index: 4, kind: input, shape index: {}]   ;;  %s2419_s5 = inlined_call_operand.hbm [shape: f32[128,128], index: 5, kind: input, shape index: {}]   ;;  %s2420_s6 = inlined_call_operand.hbm [shape: f32[128,128], index: 6, kind: input, shape index: {}]   ;;  %s2421_s7 = inlined_call_operand.vmem [shape: f32[8,128], index: 7, kind: input, shape index: {}]   ;;  %s2422_s8 = inlined_call_operand.vmem [shape: f32[8,128], index: 8, kind: output, shape index: {0}]   ;;  %s2423_s9 = inlined_call_operand.hbm [shape: f32[8,8,128], index: 9, kind: output, shape index: {1}]  }
   0x1   :  { %16 = vsyncpa [#allocation6], 0 }
   0x2   :  { %17 = vsyncpa [#allocation9], 0 }
   0x3   :  { %18 = vsyncpa [#allocation4], 0  ;;  %s1856_s30 = smov [#allocation5]   ;;  %s1857_s11 = smov [#allocation2]  }
   0x4   :  { %s40_s10 = sshll.u32 %s1856_s30, 4  ;;  %s26_s12 = sshll.u32 %s1857_s11, 4  ;;  %s41_s10 = int_to_ptr.vmem [resolvable:$true] %s40_s10  ;;  %s27_s12 = int_to_ptr.vmem [resolvable:$true] %s26_s12 }
   0x5   :  { %s1756_s13 = scalar_lea.vmem %s41_s10, 2048  ;;  %p1761_p1 = scmp.lt.s32.totalorder %s41_s10, %s41_s10 }
   0x6   :  { %p1757_p0 = scmp.ne.s32.totalorder %s41_s10, %s1756_s13  ;;  %p1762_p2 = scmp.lt.s32.totalorder %s1756_s13, %s1756_s13 }
   0x8   :  { %p1763_p3 = por %p1762_p2, %p1761_p1 }
   0xa   :  { %p1764_p4 = pnand %p1763_p3, %p1757_p0 }
   0xc   :  { %1767 = shalt.err (!%p1764_p4)
}
   0xd   :  { %s1858_s14 = smov 128   ;;  %s1859_s15 = smov 8  }
   0xe   :  { %46 = dma.hbm_to_vmem [thread:$0]  %s2417_s3, 2048, %s41_s10, [#allocation6], %s1858_s14, %s1858_s14, %s1859_s15  }
   0xf   :  { %s1776_s18 = scalar_lea.vmem %s27_s12, 12288  ;;  %p1781_p6 = scmp.lt.s32.totalorder %s27_s12, %s27_s12 }
  0x10   :  { %p1777_p5 = scmp.ne.s32.totalorder %s27_s12, %s1776_s18  ;;  %p1782_p7 = scmp.lt.s32.totalorder %s1776_s18, %s1776_s18 }
  0x12   :  { %p1783_p8 = por %p1782_p7, %p1781_p6 }
  0x14   :  { %p1784_p9 = pnand %p1783_p8, %p1777_p5 }
  0x16   :  { %1787 = shalt.err (!%p1784_p9)
}
  0x17   :  { %32 = dma.hbm_to_vmem [thread:$0]  %s2415_s1, 12288, %s27_s12, [#allocation3], %s1858_s14, %s1858_s14, %s1859_s15  }
  0x18   :  { %s1860_s21 = smov [#allocation7]   ;;  %s1861_s23 = smov [#allocation8]  }
  0x19   :  { %s54_s22 = sshll.u32 %s1860_s21, 4  ;;  %s66_s24 = sshll.u32 %s1861_s23, 4  ;;  %s55_s22 = int_to_ptr.vmem [resolvable:$true] %s54_s22  ;;  %s67_s24 = int_to_ptr.vmem [resolvable:$true] %s66_s24 }
  0x1a   :  { %s1796_s3 = scalar_lea.vmem %s55_s22, 2048  ;;  %p1801_p11 = scmp.lt.s32.totalorder %s55_s22, %s55_s22 }
  0x1b   :  { %p1797_p10 = scmp.ne.s32.totalorder %s55_s22, %s1796_s3  ;;  %p1802_p12 = scmp.lt.s32.totalorder %s1796_s3, %s1796_s3 }
  0x1d   :  { %p1803_p13 = por %p1802_p12, %p1801_p11 }
  0x1f   :  { %p1804_p0 = pnand %p1803_p13, %p1797_p10 }
  0x21   :  { %1807 = shalt.err (!%p1804_p0)
}
  0x22   :  { %60 = dma.hbm_to_vmem [thread:$0]  %s2419_s5, 2048, %s55_s22, [#allocation6], %s1858_s14, %s1858_s14, %s1859_s15  }
  0x23   :  { %s1816_s1 = scalar_lea.vmem %s67_s24, 2048  ;;  %p1821_p2 = scmp.lt.s32.totalorder %s67_s24, %s67_s24 }
  0x24   :  { %p1817_p1 = scmp.ne.s32.totalorder %s67_s24, %s1816_s1  ;;  %p1822_p3 = scmp.lt.s32.totalorder %s1816_s1, %s1816_s1 }
  0x26   :  { %p1823_p4 = por %p1822_p3, %p1821_p2 }
  0x28   :  { %p1824_p5 = pnand %p1823_p4, %p1817_p1 }
  0x2a   :  { %1827 = shalt.err (!%p1824_p5)
}
  0x2b   :  { %72 = dma.hbm_to_vmem [thread:$0]  %s2420_s6, 2048, %s67_s24, [#allocation9], %s1858_s14, %s1858_s14, %s1859_s15  }
  0x2c   :  { %1848 = dma.done.wait [#allocation3], 12288  }
  0x2d   :  { %1849 = vsyncadd [#allocation3], 4294955008 }
  0x2e   :  { %1850 = dma.done.wait [#allocation6], 4096  }
  0x2f   :  { %1851 = vsyncadd [#allocation6], 4294963200 }
  0x30   :  { %1852 = dma.done.wait [#allocation9], 2048  }
  0x31   :  { %1853 = vsyncadd [#allocation9], 4294965248  ;;  %v127_v0 = vld [vmem:[#allocation2 + $0xf8] sm:$0xff]  ;;  %v126_v2 = vld [vmem:[#allocation2 + $0xf0] sm:$0xff]  ;;  %vm1863_vm0 = vmmov 0  }
  0x32   :  { %v111_v1 = vld [vmem:[#allocation2 + $0x78] sm:$0xff]  ;;  %1320 = vmatprep.subr.mxu1 %v127_v0  ;;  %v110_v3 = vld [vmem:[#allocation2 + $0x70] sm:$0xff]  ;;  %v125_v4 = vld [vmem:[#allocation2 + $0xe8] sm:$0xff] }
  0x33   :  { %1321 = vmatpush3.msra.mxu1 %v111_v1  ;;  %v109_v5 = vld [vmem:[#allocation2 + $0x68] sm:$0xff]  ;;  %v124_v6 = vld [vmem:[#allocation2 + $0xe0] sm:$0xff]  ;;  %v123_v8 = vld [vmem:[#allocation2 + $0xd8] sm:$0xff] }
  0x34   :  { %1322 = vmatprep.subr.mxu1 %v126_v2  ;;  %v108_v7 = vld [vmem:[#allocation2 + $0x60] sm:$0xff]  ;;  %v107_v9 = vld [vmem:[#allocation2 + $0x58] sm:$0xff]  ;;  %v122_v10 = vld [vmem:[#allocation2 + $0xd0] sm:$0xff] }
  0x35   :  { %1323 = vmatpush3.msra.mxu1 %v110_v3  ;;  %v106_v11 = vld [vmem:[#allocation2 + $0x50] sm:$0xff]  ;;  %v121_v12 = vld [vmem:[#allocation2 + $0xc8] sm:$0xff]  ;;  %v191_v15 = vld [vmem:[#allocation2 + $0x2f8] sm:$0xff] }
  0x36   :  { %1324 = vmatprep.subr.mxu1 %v125_v4  ;;  %v91_v13 = vld [vmem:[%s2414_s0 + $0x8] sm:$0xff]  ;;  %v120_v16 = vld [vmem:[#allocation2 + $0xc0] sm:$0xff]  ;;  %1390 = vmatprep.subr.mxu0 %v191_v15  ;;  %v175_v17 = vld [vmem:[#allocation2 + $0x278] sm:$0xff] }
  0x37   :  { %1325 = vmatpush3.msra.mxu1 %v109_v5  ;;  %v105_v14 = vld [vmem:[#allocation2 + $0x48] sm:$0xff]  ;;  %260 = vmatprep.mubr.f32.mxu1 %v91_v13  ;;  %v104_v18 = vld [vmem:[#allocation2 + $0x40] sm:$0xff]  ;;  %v190_v19 = vld [vmem:[#allocation2 + $0x2f0] sm:$0xff] }
  0x38   :  { %1326 = vmatprep.subr.mxu1 %v124_v6  ;;  %1391 = vmatpush3.msra.mxu0 %v175_v17  ;;  %v174_v20 = vld [vmem:[#allocation2 + $0x270] sm:$0xff]  ;;  %v119_v21 = vld [vmem:[#allocation2 + $0xb8] sm:$0xff]  ;;  %v189_v22 = vld [vmem:[#allocation2 + $0x2e8] sm:$0xff] }
  0x39   :  { %1327 = vmatpush3.msra.mxu1 %v108_v7  ;;  %1392 = vmatprep.subr.mxu0 %v190_v19  ;;  %v103_v23 = vld [vmem:[#allocation2 + $0x38] sm:$0xff]  ;;  %v173_v24 = vld [vmem:[#allocation2 + $0x268] sm:$0xff]  ;;  %v188_v25 = vld [vmem:[#allocation2 + $0x2e0] sm:$0xff] }
  0x3a   :  { %1328 = vmatprep.subr.mxu1 %v123_v8  ;;  %1393 = vmatpush3.msra.mxu0 %v174_v20  ;;  %v118_v26 = vld [vmem:[#allocation2 + $0xb0] sm:$0xff]  ;;  %v172_v27 = vld [vmem:[#allocation2 + $0x260] sm:$0xff]  ;;  %v187_v29 = vld [vmem:[#allocation2 + $0x2d8] sm:$0xff] }
  0x3b   :  { %1329 = vmatpush3.msra.mxu1 %v107_v9  ;;  %1394 = vmatprep.subr.mxu0 %v189_v22  ;;  %v102_v28 = vld [vmem:[#allocation2 + $0x30] sm:$0xff]  ;;  %v117_v30 = vld [vmem:[#allocation2 + $0xa8] sm:$0xff]  ;;  %v171_v31 = vld [vmem:[#allocation2 + $0x258] sm:$0xff] }
  0x3c   :  { %1330 = vmatprep.subr.mxu1 %v122_v10  ;;  %1395 = vmatpush3.msra.mxu0 %v173_v24  ;;  %v101_v32 = vld [vmem:[#allocation2 + $0x28] sm:$0xff]  ;;  %v186_v33 = vld [vmem:[#allocation2 + $0x2d0] sm:$0xff]  ;;  %v116_v34 = vld [vmem:[#allocation2 + $0xa0] sm:$0xff] }
  0x3d   :  { %1331 = vmatpush3.msra.mxu1 %v106_v11  ;;  %1396 = vmatprep.subr.mxu0 %v188_v25  ;;  %v170_v35 = vld [vmem:[#allocation2 + $0x250] sm:$0xff]  ;;  %v100_v36 = vld [vmem:[#allocation2 + $0x20] sm:$0xff]  ;;  %v185_v37 = vld [vmem:[#allocation2 + $0x2c8] sm:$0xff] }
  0x3e   :  { %1332 = vmatprep.subr.mxu1 %v121_v12  ;;  %1397 = vmatpush3.msra.mxu0 %v172_v27  ;;  %v115_v38 = vld [vmem:[#allocation2 + $0x98] sm:$0xff]  ;;  %v169_v39 = vld [vmem:[#allocation2 + $0x248] sm:$0xff]  ;;  %v184_v41 = vld [vmem:[#allocation2 + $0x2c0] sm:$0xff] }
  0x3f   :  { %1333 = vmatpush3.msra.mxu1 %v105_v14  ;;  %1398 = vmatprep.subr.mxu0 %v187_v29  ;;  %v99_v40 = vld [vmem:[#allocation2 + $0x18] sm:$0xff]  ;;  %v114_v42 = vld [vmem:[#allocation2 + $0x90] sm:$0xff]  ;;  %v168_v43 = vld [vmem:[#allocation2 + $0x240] sm:$0xff] }
  0x40   :  { %1334 = vmatprep.subr.mxu1 %v120_v16  ;;  %1399 = vmatpush3.msra.mxu0 %v171_v31  ;;  %v98_v44 = vld [vmem:[#allocation2 + $0x10] sm:$0xff]  ;;  %v183_v45 = vld [vmem:[#allocation2 + $0x2b8] sm:$0xff]  ;;  %v113_v46 = vld [vmem:[#allocation2 + $0x88] sm:$0xff] }
  0x41   :  { %1335 = vmatpush3.msra.mxu1 %v104_v18  ;;  %1400 = vmatprep.subr.mxu0 %v186_v33  ;;  %v167_v47 = vld [vmem:[#allocation2 + $0x238] sm:$0xff]  ;;  %v97_v48 = vld [vmem:[#allocation2 + $0x8] sm:$0xff]  ;;  %v182_v49 = vld [vmem:[#allocation2 + $0x2b0] sm:$0xff] }
  0x42   :  { %1336 = vmatprep.subr.mxu1 %v119_v21  ;;  %1401 = vmatpush3.msra.mxu0 %v170_v35  ;;  %v112_v50 = vld [vmem:[#allocation2 + $0x80] sm:$0xff]  ;;  %v166_v51 = vld [vmem:[#allocation2 + $0x230] sm:$0xff]  ;;  %v181_v53 = vld [vmem:[#allocation2 + $0x2a8] sm:$0xff] }
  0x43   :  { %1337 = vmatpush3.msra.mxu1 %v103_v23  ;;  %1402 = vmatprep.subr.mxu0 %v185_v37  ;;  %v96_v52 = vld [vmem:[#allocation2] sm:$0xff]  ;;  %v159_v55 = vld [vmem:[#allocation2 + $0x1f8] sm:$0xff]  ;;  %v165_v57 = vld [vmem:[#allocation2 + $0x228] sm:$0xff] }
  0x44   :  { %1338 = vmatprep.subr.mxu1 %v118_v26  ;;  %1403 = vmatpush3.msra.mxu0 %v169_v39  ;;  %v90_v54 = vld [vmem:[%s2414_s0] sm:$0xff]  ;;  %v143_v56 = vld [vmem:[#allocation2 + $0x178] sm:$0xff]  ;;  %v158_v58 = vld [vmem:[#allocation2 + $0x1f0] sm:$0xff] }
  0x45   :  { %1339 = vmatpush3.msra.mxu1 %v102_v28  ;;  %1404 = vmatprep.subr.mxu0 %v184_v41  ;;  %v180_v59 = vld [vmem:[#allocation2 + $0x2a0] sm:$0xff]  ;;  %v142_v60 = vld [vmem:[#allocation2 + $0x170] sm:$0xff]  ;;  %v157_v62 = vld [vmem:[#allocation2 + $0x1e8] sm:$0xff] }
  0x46   :  { %1340 = vmatprep.subr.mxu1 %v117_v30  ;;  %1405 = vmatpush3.msra.mxu0 %v168_v43  ;;  %v164_v61 = vld [vmem:[#allocation2 + $0x220] sm:$0xff]  ;;  %v179_v63 = vld [vmem:[#allocation2 + $0x298] sm:$0xff]  ;;  %v141_v0 = vld [vmem:[#allocation2 + $0x168] sm:$0xff] }
  0x47   :  { %1341 = vmatpush3.msra.mxu1 %v101_v32  ;;  %1406 = vmatprep.subr.mxu0 %v183_v45  ;;  %v163_v1 = vld [vmem:[#allocation2 + $0x218] sm:$0xff]  ;;  %v156_v2 = vld [vmem:[#allocation2 + $0x1e0] sm:$0xff]  ;;  %v178_v3 = vld [vmem:[#allocation2 + $0x290] sm:$0xff] }
  0x48   :  { %1342 = vmatprep.subr.mxu1 %v116_v34  ;;  %1407 = vmatpush3.msra.mxu0 %v167_v47  ;;  %v140_v4 = vld [vmem:[#allocation2 + $0x160] sm:$0xff]  ;;  %v162_v5 = vld [vmem:[#allocation2 + $0x210] sm:$0xff]  ;;  %v155_v6 = vld [vmem:[#allocation2 + $0x1d8] sm:$0xff] }
  0x49   :  { %1343 = vmatpush3.msra.mxu1 %v100_v36  ;;  %1408 = vmatprep.subr.mxu0 %v182_v49  ;;  %v177_v7 = vld [vmem:[#allocation2 + $0x288] sm:$0xff]  ;;  %v139_v8 = vld [vmem:[#allocation2 + $0x158] sm:$0xff]  ;;  %v154_v10 = vld [vmem:[#allocation2 + $0x1d0] sm:$0xff] }
  0x4a   :  { %1344 = vmatprep.subr.mxu1 %v115_v38  ;;  %1409 = vmatpush3.msra.mxu0 %v166_v51  ;;  %v161_v9 = vld [vmem:[#allocation2 + $0x208] sm:$0xff]  ;;  %v176_v11 = vld [vmem:[#allocation2 + $0x280] sm:$0xff]  ;;  %v138_v12 = vld [vmem:[#allocation2 + $0x150] sm:$0xff] }
  0x4b   :  { %1345 = vmatpush3.msra.mxu1 %v99_v40  ;;  %1410 = vmatprep.subr.mxu0 %v181_v53  ;;  %v93_v13 = vld [vmem:[%s2414_s0 + $0x18] sm:$0xff]  ;;  %v153_v14 = vld [vmem:[#allocation2 + $0x1c8] sm:$0xff]  ;;  %v160_v15 = vld [vmem:[#allocation2 + $0x200] sm:$0xff] }
  0x4c   :  { %1346 = vmatprep.subr.mxu1 %v114_v42  ;;  %1411 = vmatpush3.msra.mxu0 %v165_v57  ;;  %v137_v16 = vld [vmem:[#allocation2 + $0x148] sm:$0xff]  ;;  %v152_v18 = vld [vmem:[#allocation2 + $0x1c0] sm:$0xff]  ;;  %v151_v21 = vld [vmem:[#allocation2 + $0x1b8] sm:$0xff] }
  0x4d   :  { %1347 = vmatpush3.msra.mxu1 %v98_v44  ;;  %1412 = vmatprep.subr.mxu0 %v180_v59  ;;  %v95_v17 = vld [vmem:[%s2414_s0 + $0x28] sm:$0xff]  ;;  %v94_v19 = vld [vmem:[%s2414_s0 + $0x20] sm:$0xff]  ;;  %v135_v22 = vld [vmem:[#allocation2 + $0x138] sm:$0xff] }
  0x4e   :  { %1348 = vmatprep.subr.mxu1 %v113_v46  ;;  %1413 = vmatpush3.msra.mxu0 %v164_v61  ;;  %v136_v20 = vld [vmem:[#allocation2 + $0x140] sm:$0xff]  ;;  %v150_v23 = vld [vmem:[#allocation2 + $0x1b0] sm:$0xff]  ;;  %v149_v25 = vld [vmem:[#allocation2 + $0x1a8] sm:$0xff] }
  0x4f   :  { %1349 = vmatpush3.msra.mxu1 %v97_v48  ;;  %1414 = vmatprep.subr.mxu0 %v179_v63  ;;  %v134_v24 = vld [vmem:[#allocation2 + $0x130] sm:$0xff]  ;;  %v133_v26 = vld [vmem:[#allocation2 + $0x128] sm:$0xff]  ;;  %v148_v27 = vld [vmem:[#allocation2 + $0x1a0] sm:$0xff] }
  0x50   :  { %1350 = vmatprep.subr.mxu1 %v112_v50  ;;  %1415 = vmatpush3.msra.mxu0 %v163_v1  ;;  %v132_v28 = vld [vmem:[#allocation2 + $0x120] sm:$0xff]  ;;  %v147_v29 = vld [vmem:[#allocation2 + $0x198] sm:$0xff]  ;;  %v146_v31 = vld [vmem:[#allocation2 + $0x190] sm:$0xff]  ;;  %v192_v1 = vlaneseq }
  0x51   :  { %1351 = vmatpush3.msra.mxu1 %v96_v52  ;;  %1416 = vmatprep.subr.mxu0 %v178_v3  ;;  %v131_v30 = vld [vmem:[#allocation2 + $0x118] sm:$0xff]  ;;  %v130_v32 = vld [vmem:[#allocation2 + $0x110] sm:$0xff]  ;;  %v145_v33 = vld [vmem:[#allocation2 + $0x188] sm:$0xff] }
  0x52   :  { %261 = vmatmul.mubr.f32.vlgmr.msra.gmra.mxu1 %v90_v54  ;;  %1355 = vmatprep.subr.mxu1 %v159_v55  ;;  %v129_v34 = vld [vmem:[#allocation2 + $0x108] sm:$0xff]  ;;  %v144_v35 = vld [vmem:[#allocation2 + $0x180] sm:$0xff]  ;;  %v92_v37 = vld [vmem:[%s2414_s0 + $0x10] sm:$0xff] }
  0x53   :  { %1356 = vmatpush3.msra.mxu1 %v143_v56  ;;  %1417 = vmatpush3.msra.mxu0 %v162_v5  ;;  %v128_v36 = vld [vmem:[#allocation2 + $0x100] sm:$0xff]  ;;  %v1958_v38 = vld [vmem:[#allocation7 + $0x8] sm:$0xff]  ;;  %v1966_v41 = vld [vmem:[#allocation7 + $0x10] sm:$0xff] }
  0x54   :  { %1357 = vmatprep.subr.mxu1 %v158_v58  ;;  %1418 = vmatprep.subr.mxu0 %v177_v7  ;;  %v1960_v39 = vld [vmem:[#allocation7] sm:$0xff]  ;;  %v765_v40 = vmul.f32 %v1958_v38, %v1958_v38  ;;  %v766_v43 = vmul.f32 %v1966_v41, %v1966_v41  ;;  %v1978_v46 = vld [vmem:[#allocation7 + $0x30] sm:$0xff]  ;;  %v1981_v47 = vld [vmem:[#allocation7 + $0x18] sm:$0xff]  ;;  %v1862_v58 = vmov 0.0  }
  0x55   :  { %1358 = vmatpush3.msra.mxu1 %v142_v60  ;;  %1419 = vmatpush3.msra.mxu0 %v161_v9  ;;  %v764_v42 = vmul.f32 %v1960_v39, %v1960_v39  ;;  %v1973_v44 = vld [vmem:[#allocation7 + $0x20] sm:$0xff]  ;;  %v770_v48 = vmul.f32 %v1978_v46, %v1978_v46  ;;  %v1991_v51 = vld [vmem:[#allocation7 + $0x50] sm:$0xff]  ;;  %v427_v57 = vld [vmem:[%s2416_s2 + $0x78] sm:$0xff] }
  0x56   :  { %1359 = vmatprep.subr.mxu1 %v157_v62  ;;  %1420 = vmatprep.subr.mxu0 %v176_v11  ;;  %v768_v45 = vmul.f32 %v1973_v44, %v1973_v44  ;;  %v1986_v49 = vld [vmem:[#allocation7 + $0x40] sm:$0xff]  ;;  %v774_v52 = vmul.f32 %v1991_v51, %v1991_v51  ;;  %v2001_v55 = vld [vmem:[#allocation7 + $0x70] sm:$0xff]  ;;  %v425_v60 = vld [vmem:[%s2416_s2 + $0x68] sm:$0xff] }
  0x57   :  { %1360 = vmatpush3.msra.mxu1 %v141_v0  ;;  %330 = vmatprep.mubr.f32.mxu1 %v93_v13  ;;  %v772_v50 = vmul.f32 %v1986_v49, %v1986_v49  ;;  %v1996_v53 = vld [vmem:[#allocation7 + $0x60] sm:$0xff]  ;;  %v778_v56 = vmul.f32 %v2001_v55, %v2001_v55  ;;  %v426_v59 = vld [vmem:[%s2416_s2 + $0x70] sm:$0xff]  ;;  %v423_v62 = vld [vmem:[%s2416_s2 + $0x58] sm:$0xff] }
  0x58   :  { %1361 = vmatprep.subr.mxu1 %v156_v2  ;;  %1421 = vmatpush3.msra.mxu0 %v160_v15  ;;  %v776_v54 = vmul.f32 %v1996_v53, %v1996_v53  ;;  %v424_v61 = vld [vmem:[%s2416_s2 + $0x60] sm:$0xff]  ;;  %v422_v63 = vld [vmem:[%s2416_s2 + $0x50] sm:$0xff]  ;;  %v421_v0 = vld [vmem:[%s2416_s2 + $0x48] sm:$0xff]  ;;  %v2036_v2 = vshrl.u32 %v192_v1, 7 }
  0x59   :  { %1362 = vmatpush3.msra.mxu1 %v140_v4  ;;  %400 = vmatprep.mubr.f32.mxu0 %v95_v17  ;;  %v2044_v5 = vld [vmem:[%s2421_s7] sm:$0xff]  ;;  %v510_v1 = vld [vmem:[#allocation5 + $0x38] sm:$0xff] }
  0x5a   :  { %1363 = vmatprep.subr.mxu1 %v155_v6  ;;  %401 = vmatmul.mubr.f32.vlgmr.msra.gmra.mxu0 %v94_v19  ;;  %v2039_v4 = vsub.s32 0, %v2036_v2  ;;  %v767_v19 = vmul.f32 %v1981_v47, %v1981_v47 }
  0x5b   :  { %1364 = vmatpush3.msra.mxu1 %v139_v8  ;;  %718 = vadd.xlane.f32.xlu1 %v1958_v38 }
  0x5c   :  { %1365 = vmatprep.subr.mxu1 %v154_v10  ;;  %716 = vadd.xlane.f32.xlu0 %v1960_v39  ;;  %v195_v8 = vrot.slane %v2044_v5, %v2039_v4 }
  0x5d   :  { %1366 = vmatpush3.msra.mxu1 %v138_v12  ;;  %1543 = vmatprep.subr.mxu0 %v1862_v58 }
  0x5e   :  { %1367 = vmatprep.subr.mxu1 %v153_v14  ;;  %1575 = vmatprep.mubr.msk.f32.mxu0 %vm1863_vm0, %v1862_v58 }
  0x5f   :  { %1368 = vmatpush3.msra.mxu1 %v137_v16  ;;  %720 = vadd.xlane.f32.xlu1 %v1966_v41 }
  0x60   :  { %1369 = vmatprep.subr.mxu1 %v152_v18  ;;  %782 = vadd.xlane.f32.xlu0 %v765_v40  ;;  %v2116_v40 = vld [vmem:[#allocation7 + $0x68] sm:$0xff] }
  0x61   :  { %1370 = vmatpush3.msra.mxu1 %v136_v20  ;;  %v2054_v20 = vld [vmem:[#allocation7 + $0x28] sm:$0xff] }
  0x62   :  { %1371 = vmatprep.subr.mxu1 %v151_v21  ;;  %v769_v21 = vmul.f32 %v2054_v20, %v2054_v20 }
  0x63   :  { %1372 = vmatpush3.msra.mxu1 %v135_v22  ;;  %780 = vadd.xlane.f32.xlu1 %v764_v42  ;;  %v420_v22 = vld [vmem:[%s2416_s2 + $0x40] sm:$0xff]  ;;  %v777_v42 = vmul.f32 %v2116_v40, %v2116_v40 }
  0x64   :  { %1373 = vmatprep.subr.mxu1 %v150_v23  ;;  %722 = vadd.xlane.f32.xlu0 %v1981_v47  ;;  %v419_v23 = vld [vmem:[%s2416_s2 + $0x38] sm:$0xff] }
  0x65   :  { %1374 = vmatpush3.msra.mxu1 %v134_v24  ;;  %v2066_v24 = vld [vmem:[#allocation7 + $0x38] sm:$0xff] }
  0x66   :  { %1375 = vmatprep.subr.mxu1 %v149_v25  ;;  %v418_v25 = vld [vmem:[%s2416_s2 + $0x30] sm:$0xff] }
  0x67   :  { %1376 = vmatpush3.msra.mxu1 %v133_v26  ;;  %784 = vadd.xlane.f32.xlu1 %v766_v43  ;;  %v417_v26 = vld [vmem:[%s2416_s2 + $0x28] sm:$0xff]  ;;  %v2121_v43 = vld [vmem:[#allocation7 + $0x78] sm:$0xff] }
  0x68   :  { %1377 = vmatprep.subr.mxu1 %v148_v27  ;;  %v771_v27 = vmul.f32 %v2066_v24, %v2066_v24 }
  0x69   :  { %1378 = vmatpush3.msra.mxu1 %v132_v28  ;;  %v416_v28 = vld [vmem:[%s2416_s2 + $0x20] sm:$0xff] }
  0x6a   :  { %1379 = vmatprep.subr.mxu1 %v147_v29  ;;  %v415_v29 = vld [vmem:[%s2416_s2 + $0x18] sm:$0xff] }
  0x6b   :  { %1380 = vmatpush3.msra.mxu1 %v131_v30  ;;  %724 = vadd.xlane.f32.xlu1 %v1973_v44  ;;  %v2087_v30 = vld [vmem:[#allocation7 + $0x48] sm:$0xff] }
  0x6c   :  { %1381 = vmatprep.subr.mxu1 %v146_v31  ;;  %v414_v31 = vld [vmem:[%s2416_s2 + $0x10] sm:$0xff] }
  0x6d   :  { %1382 = vmatpush3.msra.mxu1 %v130_v32  ;;  %v413_v32 = vld [vmem:[%s2416_s2 + $0x8] sm:$0xff] }
  0x6e   :  { %1383 = vmatprep.subr.mxu1 %v145_v33  ;;  %v773_v33 = vmul.f32 %v2087_v30, %v2087_v30 }
  0x6f   :  { %1384 = vmatpush3.msra.mxu1 %v129_v34  ;;  %788 = vadd.xlane.f32.xlu1 %v768_v45  ;;  %v412_v34 = vld [vmem:[%s2416_s2] sm:$0xff]  ;;  %v779_v45 = vmul.f32 %v2121_v43, %v2121_v43 }
  0x70   :  { %1385 = vmatprep.subr.mxu1 %v144_v35  ;;  %v2104_v35 = vld [vmem:[#allocation8 + $0x78] sm:$0xff] }
  0x71   :  { %1386 = vmatpush3.msra.mxu1 %v128_v36  ;;  %v2111_v36 = vld [vmem:[#allocation7 + $0x58] sm:$0xff] }
  0x72   :  { %331 = vmatmul.mubr.f32.vlgmr.msra.gmra.mxu1 %v92_v37  ;;  %1508 = vmatprep.subr.mxu1 %v1862_v58  ;;  %v775_v37 = vmul.f32 %v2111_v36, %v2111_v36 }
  0x73   :  { %728 = vadd.xlane.f32.xlu1 %v1978_v46  ;;  %1509 = vmatpush3.msra.mxu1 %v427_v57  ;;  %v515_v57 = vld [vmem:[#allocation5 + $0x60] sm:$0xff] }
  0x74   :  { %1510 = vmatprep.subr.mxu1 %v1862_v58  ;;  %1540 = vmatprep.mubr.msk.f32.mxu1 %vm1863_vm0, %v1862_v58 }
  0x75   :  { %1511 = vmatpush3.msra.mxu1 %v426_v59  ;;  %v514_v59 = vld [vmem:[#allocation5 + $0x58] sm:$0xff] }
  0x76   :  { %1512 = vmatprep.subr.mxu1 %v1862_v58 }
  0x77   :  { %792 = vadd.xlane.f32.xlu1 %v770_v48  ;;  %1513 = vmatpush3.msra.mxu1 %v425_v60  ;;  %v513_v60 = vld [vmem:[#allocation5 + $0x50] sm:$0xff] }
  0x78   :  { %1514 = vmatprep.subr.mxu1 %v1862_v58 }
  0x79   :  { %1515 = vmatpush3.msra.mxu1 %v424_v61 }
  0x7a   :  { %1516 = vmatprep.subr.mxu1 %v1862_v58 }
  0x7b   :  { %732 = vadd.xlane.f32.xlu1 %v1986_v49  ;;  %1517 = vmatpush3.msra.mxu1 %v423_v62  ;;  %v512_v62 = vld [vmem:[#allocation5 + $0x48] sm:$0xff] }
  0x7c   :  { %1518 = vmatprep.subr.mxu1 %v1862_v58 }
  0x7d   :  { %1519 = vmatpush3.msra.mxu1 %v422_v63  ;;  %v511_v63 = vld [vmem:[#allocation5 + $0x40] sm:$0xff] }
  0x7e   :  { %1520 = vmatprep.subr.mxu1 %v1862_v58 }
  0x7f   :  { %796 = vadd.xlane.f32.xlu1 %v772_v50  ;;  %1521 = vmatpush3.msra.mxu1 %v421_v0  ;;  %v518_v50 = vld [vmem:[#allocation5 + $0x78] sm:$0xff] }
  0x80   :  { %1522 = vmatprep.subr.mxu1 %v1862_v58  ;;  %1544 = vmatpush3.msra.mxu0 %v518_v50  ;;  %v946_v50 = vsub.s32 4, %v2036_v2 }
  0x81   :  { %1523 = vmatpush3.msra.mxu1 %v420_v22  ;;  %1545 = vmatprep.subr.mxu0 %v1862_v58 }
  0x82   :  { %1524 = vmatprep.subr.mxu1 %v1862_v58 }
  0x83   :  { %736 = vadd.xlane.f32.xlu1 %v1991_v51  ;;  %1525 = vmatpush3.msra.mxu1 %v419_v23 }
  0x84   :  { %1526 = vmatprep.subr.mxu1 %v1862_v58 }
  0x85   :  { %1527 = vmatpush3.msra.mxu1 %v418_v25 }
  0x86   :  { %1528 = vmatprep.subr.mxu1 %v1862_v58 }
  0x87   :  { %800 = vadd.xlane.f32.xlu1 %v774_v52  ;;  %1529 = vmatpush3.msra.mxu1 %v417_v26  ;;  %v517_v52 = vld [vmem:[#allocation5 + $0x70] sm:$0xff] }
  0x88   :  { %1530 = vmatprep.subr.mxu1 %v1862_v58  ;;  %1546 = vmatpush3.msra.mxu0 %v517_v52 }
  0x89   :  { %1531 = vmatpush3.msra.mxu1 %v416_v28  ;;  %1547 = vmatprep.subr.mxu0 %v1862_v58 }
  0x8a   :  { %1532 = vmatprep.subr.mxu1 %v1862_v58 }
  0x8b   :  { %740 = vadd.xlane.f32.xlu1 %v1996_v53  ;;  %1533 = vmatpush3.msra.mxu1 %v415_v29 }
  0x8c   :  { %1534 = vmatprep.subr.mxu1 %v1862_v58 }
  0x8d   :  { %1535 = vmatpush3.msra.mxu1 %v414_v31  ;;  %v926_v31 = vsub.s32 3, %v2036_v2 }
  0x8e   :  { %1536 = vmatprep.subr.mxu1 %v1862_v58 }
  0x8f   :  { %804 = vadd.xlane.f32.xlu1 %v776_v54  ;;  %1537 = vmatpush3.msra.mxu1 %v413_v32  ;;  %v516_v54 = vld [vmem:[#allocation5 + $0x68] sm:$0xff] }
  0x90   :  { %1538 = vmatprep.subr.mxu1 %v1862_v58  ;;  %1548 = vmatpush3.msra.mxu0 %v516_v54 }
  0x91   :  { %1539 = vmatpush3.msra.mxu1 %v412_v34  ;;  %1549 = vmatprep.subr.mxu0 %v1862_v58 }
  0x92   :  { %1578 = vmatprep.subr.mxu1 %v2104_v35  ;;  %1550 = vmatpush3.msra.mxu0 %v515_v57 }
  0x93   :  { %744 = vadd.xlane.f32.xlu1 %v2001_v55  ;;  %1551 = vmatprep.subr.mxu0 %v1862_v58 }
  0x94   :  { %1552 = vmatpush3.msra.mxu0 %v514_v59 }
  0x95   :  { %1553 = vmatprep.subr.mxu0 %v1862_v58 }
  0x96   :  { %1554 = vmatpush3.msra.mxu0 %v513_v60 }
  0x97   :  { %808 = vadd.xlane.f32.xlu1 %v778_v56  ;;  %1555 = vmatprep.subr.mxu0 %v1862_v58 }
  0x98   :  { %1556 = vmatpush3.msra.mxu0 %v512_v62 }
  0x99   :  { %1557 = vmatprep.subr.mxu0 %v1862_v58 }
  0x9a   :  { %1558 = vmatpush3.msra.mxu0 %v511_v63 }
  0x9b   :  { %1559 = vmatprep.subr.mxu0 %v1862_v58 }
  0x9c   :  { %1560 = vmatpush3.msra.mxu0 %v510_v1 }
  0x9d   :  { %1561 = vmatprep.subr.mxu0 %v1862_v58 }
  0xe4   :  { %v2126_v48 = vpop.xlane.xlu1 %718 }
  0xe5   :  { %v2146_v34 = vmul.f32 0.03125, %v2126_v48 }
  0xe7   :  { %v829_v54 = vmul.f32 %v2146_v34, %v2146_v34 }
  0xe8   :  { %v721_v56 = vpop.xlane.xlu1 %720 }
  0xec   :  { %v781_v61 = vpop.xlane.xlu1 %780 }
  0xf0   :  { %v785_v0 = vpop.xlane.xlu1 %784 }
  0xf1   :  { %v814_v60 = vmul.f32 0.03125, %v785_v0 }
 0x112   :  { %v1352_v3 = vpop.f32.mrf.mxu1 }
 0x114   :  { %v1353_v6 = vpop.f32.mrf.mxu1 }
 0x115   :  { %v1354_v9 = vadd.f32 %v1353_v6, %v1352_v3  ;;  %v509_v3 = vld [vmem:[#allocation5 + $0x30] sm:$0xff]  ;;  %v725_v6 = vpop.xlane.xlu1 %724 }
 0x116   :  { %1562 = vmatpush3.msra.mxu0 %v509_v3 }
 0x117   :  { %v263_v13 = vadd.f32 %v1354_v9, %v195_v8  ;;  %1563 = vmatprep.subr.mxu0 %v1862_v58  ;;  %v507_v8 = vld [vmem:[#allocation5 + $0x20] sm:$0xff]  ;;  %v506_v9 = vld [vmem:[#allocation5 + $0x18] sm:$0xff] }
 0x11a   :  { %v1422_v7 = vpop.f32.mrf.mxu0 }
 0x11c   :  { %v1423_v12 = vpop.f32.mrf.mxu0 }
 0x11d   :  { %v1424_v16 = vadd.f32 %v1423_v12, %v1422_v7  ;;  %v508_v7 = vld [vmem:[#allocation5 + $0x28] sm:$0xff] }
 0x11e   :  { %1564 = vmatpush3.msra.mxu0 %v508_v7 }
 0x11f   :  { %1565 = vmatprep.subr.mxu0 %v1862_v58 }
 0x120   :  { %1566 = vmatpush3.msra.mxu0 %v507_v8 }
 0x121   :  { %1567 = vmatprep.subr.mxu0 %v1862_v58 }
 0x122   :  { %1568 = vmatpush3.msra.mxu0 %v506_v9 }
 0x123   :  { %1569 = vmatprep.subr.mxu0 %v1862_v58 }
 0x132   :  { %v1387_v10 = vpop.f32.mrf.mxu1 }
 0x134   :  { %v1388_v11 = vpop.f32.mrf.mxu1 }
 0x135   :  { %v1389_v14 = vadd.f32 %v1388_v11, %v1387_v10  ;;  %v717_v10 = vpop.xlane.xlu0 %716  ;;  %v789_v11 = vpop.xlane.xlu1 %788 }
 0x136   :  { %v748_v12 = vmul.f32 0.03125, %v717_v10 }
 0x137   :  { %v333_v15 = vadd.f32 %v1389_v14, %v263_v13 }
 0x138   :  { %v828_v14 = vmul.f32 %v748_v12, %v748_v12  ;;  %v860_v32 = vsub.f32 %v1960_v39, %v748_v12 }
 0x139   :  { %v2048_v17 = vadd.f32 %v1424_v16, %v333_v15  ;;  %v729_v13 = vpop.xlane.xlu1 %728  ;;  %v812_v15 = vmul.f32 0.03125, %v781_v61  ;;  %v2163_v61 = vmul.f32 0.03125, %v725_v6  ;;  %v816_v6 = vmul.f32 0.03125, %v789_v11 }
 0x13a   :  { %v2168_v7 = vmul.f32 0.03125, %v729_v13 }
 0x13b   :  { %v406_v18 = vmul.f32 %v2048_v17, %v2048_v17  ;;  %v844_v16 = vsub.f32 %v812_v15, %v828_v14  ;;  %v832_v0 = vmul.f32 %v2163_v61, %v2163_v61 }
 0x13d   :  { %407 = vadd.xlane.f32.xlu0 %v406_v18  ;;  %v793_v18 = vpop.xlane.xlu1 %792 }
 0x141   :  { %786 = vadd.xlane.f32.xlu0 %v767_v19  ;;  %v876_v19 = vadd.f32 1e-05, %v844_v16  ;;  %v733_v22 = vpop.xlane.xlu1 %732  ;;  %v978_v16 = vld [vmem:[#allocation8 + $0x70] sm:$0xff] }
 0x143   :  { %1679 = vrsqrt.f32 %v876_v19 }
 0x145   :  { %726 = vadd.xlane.f32.xlu0 %v2054_v20  ;;  %v797_v25 = vpop.xlane.xlu1 %796 }
 0x149   :  { %790 = vadd.xlane.f32.xlu0 %v769_v21  ;;  %v783_v21 = vpop.xlane.xlu0 %782  ;;  %v2141_v29 = vpop.xlane.xlu1 %736 }
 0x14a   :  { %v813_v57 = vmul.f32 0.03125, %v783_v21 }
 0x14c   :  { %v845_v1 = vsub.f32 %v813_v57, %v829_v54  ;;  %v820_v57 = vmul.f32 0.03125, %v797_v25 }
 0x14d   :  { %730 = vadd.xlane.f32.xlu0 %v2066_v24  ;;  %v723_v23 = vpop.xlane.xlu0 %722  ;;  %v2156_v59 = vpop.xlane.xlu1 %800 }
 0x14e   :  { %v2165_v62 = vmul.f32 0.03125, %v723_v23  ;;  %v877_v21 = vadd.f32 1e-05, %v845_v1  ;;  %v834_v23 = vmul.f32 %v2168_v7, %v2168_v7 }
 0x150   :  { %v831_v15 = vmul.f32 %v2165_v62, %v2165_v62 }
 0x151   :  { %794 = vadd.xlane.f32.xlu0 %v771_v27  ;;  %v741_v12 = vpop.xlane.xlu1 %740 }
 0x155   :  { %734 = vadd.xlane.f32.xlu0 %v2087_v30 }
 0x159   :  { %798 = vadd.xlane.f32.xlu0 %v773_v33  ;;  %v1680_v33 = vpop.eup %1679 }
 0x15a   :  { %v908_v52 = vmul.f32 %v1680_v33, %v860_v32  ;;  %v848_v33 = vsub.f32 %v816_v6, %v832_v0 }
 0x15c   :  { %v880_v1 = vadd.f32 1e-05, %v848_v33  ;;  %v971_v33 = vld [vmem:[#allocation8 + $0x38] sm:$0xff] }
 0x15d   :  { %738 = vadd.xlane.f32.xlu0 %v2111_v36 }
 0x161   :  { %802 = vadd.xlane.f32.xlu0 %v775_v37 }
 0x165   :  { %742 = vadd.xlane.f32.xlu0 %v2116_v40 }
 0x169   :  { %806 = vadd.xlane.f32.xlu0 %v777_v42  ;;  %v2148_v42 = vmul.f32 0.03125, %v721_v56  ;;  %v2161_v56 = vrot.slane %v2044_v5, %v946_v50 }
 0x16b   :  { %v830_v48 = vmul.f32 %v2148_v42, %v2148_v42 }
 0x16d   :  { %746 = vadd.xlane.f32.xlu0 %v2121_v43  ;;  %v846_v10 = vsub.f32 %v814_v60, %v830_v48  ;;  %v975_v48 = vld [vmem:[#allocation8 + $0x58] sm:$0xff] }
 0x171   :  { %810 = vadd.xlane.f32.xlu0 %v779_v45  ;;  %v2151_v45 = vrot.slane %v2044_v5, %v926_v31  ;;  %v878_v31 = vadd.f32 1e-05, %v846_v10 }
 0x173   :  { %v928_v63 = vmul.f32 %v2151_v45, %v908_v52 }
 0x175   :  { %v948_v19 = vadd.f32 %v2161_v56, %v928_v63 }
 0x1c6   :  { %v408_v26 = vpop.xlane.xlu0 %407 }
 0x1c7   :  { %v409_v27 = vadd.f32 1e-12, %v408_v26  ;;  %v2183_v26 = vmul.f32 0.03125, %v733_v22 }
 0x1c9   :  { %1681 = vrsqrt.f32 %v409_v27 }
 0x1ca   :  { %v787_v28 = vpop.xlane.xlu0 %786  ;;  %1683 = vrsqrt.f32 %v877_v21 }
 0x1cb   :  { %v815_v8 = vmul.f32 0.03125, %v787_v28  ;;  %v977_v28 = vld [vmem:[#allocation8 + $0x68] sm:$0xff]  ;;  %1685 = vrsqrt.f32 %v878_v31 }
 0x1cd   :  { %v847_v27 = vsub.f32 %v815_v8, %v831_v15  ;;  %v974_v8 = vld [vmem:[#allocation8 + $0x50] sm:$0xff]  ;;  %v973_v15 = vld [vmem:[#allocation8 + $0x48] sm:$0xff] }
 0x1ce   :  { %v727_v37 = vpop.xlane.xlu0 %726 }
 0x1cf   :  { %v2178_v13 = vmul.f32 0.03125, %v727_v37  ;;  %v976_v37 = vld [vmem:[#allocation8 + $0x60] sm:$0xff]  ;;  %v879_v54 = vadd.f32 1e-05, %v847_v27  ;;  %v2202_v27 = vmul.f32 0.03125, %v741_v12 }
 0x1d1   :  { %v833_v50 = vmul.f32 %v2178_v13, %v2178_v13  ;;  %1687 = vrsqrt.f32 %v879_v54  ;;  %v840_v12 = vmul.f32 %v2202_v27, %v2202_v27 }
 0x1d2   :  { %v791_v39 = vpop.xlane.xlu0 %790  ;;  %1689 = vrsqrt.f32 %v880_v1 }
 0x1d3   :  { %v817_v32 = vmul.f32 0.03125, %v791_v39 }
 0x1d5   :  { %v849_v60 = vsub.f32 %v817_v32, %v833_v50 }
 0x1d6   :  { %v1682_v3 = vpop.eup %1681  ;;  %v731_v9 = vpop.xlane.xlu0 %730 }
 0x1d7   :  { %v2171_v14 = vmul.f32 %v1682_v3, %v2048_v17  ;;  %v818_v17 = vmul.f32 0.03125, %v793_v18  ;;  %v2188_v52 = vmul.f32 0.03125, %v731_v9  ;;  %v805_v18 = vpop.xlane.xlu1 %804  ;;  %v2193_v3 = vmul.f32 0.03125, %v2141_v29 }
 0x1d9   :  { %1541 = vmatmul.mubr.f32.vlgmr.msra.gmra.mxu1 %v2171_v14  ;;  %v850_v22 = vsub.f32 %v818_v17, %v834_v23  ;;  %v835_v9 = vmul.f32 %v2188_v52, %v2188_v52  ;;  %v838_v23 = vmul.f32 %v2193_v3, %v2193_v3  ;;  %v822_v17 = vmul.f32 0.03125, %v2156_v59 }
 0x1da   :  { %1579 = vmatpush3.msra.mxu1 %v2104_v35  ;;  %1610 = vmatprep.mubr.f32.mxu1 %v948_v19  ;;  %v795_v11 = vpop.xlane.xlu0 %794  ;;  %v836_v35 = vmul.f32 %v2183_v26, %v2183_v26 }
 0x1db   :  { %1580 = vmatprep.subr.mxu1 %v978_v16  ;;  %v819_v63 = vmul.f32 0.03125, %v795_v11  ;;  %v882_v25 = vadd.f32 1e-05, %v850_v22  ;;  %v745_v21 = vpop.xlane.xlu1 %744  ;;  %v972_v11 = vld [vmem:[#allocation8 + $0x40] sm:$0xff]  ;;  %v854_v59 = vsub.f32 %v822_v17, %v838_v23 }
 0x1dc   :  { %1581 = vmatpush3.msra.mxu1 %v978_v16  ;;  %v852_v0 = vsub.f32 %v820_v57, %v836_v35  ;;  %v881_v16 = vadd.f32 1e-05, %v849_v60  ;;  %v824_v35 = vmul.f32 0.03125, %v805_v18  ;;  %v2210_v54 = vmul.f32 0.03125, %v745_v21  ;;  %v970_v57 = vld [vmem:[#allocation8 + $0x30] sm:$0xff]  ;;  %v967_v21 = vld [vmem:[#allocation8 + $0x18] sm:$0xff] }
 0x1dd   :  { %1582 = vmatprep.subr.mxu1 %v977_v28  ;;  %v851_v19 = vsub.f32 %v819_v63, %v835_v9  ;;  %1691 = vrsqrt.f32 %v882_v25  ;;  %v861_v60 = vsub.f32 %v1958_v38, %v2146_v34  ;;  %v862_v63 = vsub.f32 %v1966_v41, %v2148_v42  ;;  %v968_v41 = vld [vmem:[#allocation8 + $0x20] sm:$0xff] }
 0x1de   :  { %1583 = vmatpush3.msra.mxu1 %v977_v28  ;;  %v735_v39 = vpop.xlane.xlu0 %734  ;;  %v884_v31 = vadd.f32 1e-05, %v852_v0  ;;  %1693 = vrsqrt.f32 %v881_v16  ;;  %v842_v38 = vmul.f32 %v2210_v54, %v2210_v54  ;;  %v864_v16 = vsub.f32 %v1973_v44, %v2163_v61 }
 0x1df   :  { %1584 = vmatprep.subr.mxu1 %v976_v37  ;;  %v2197_v10 = vmul.f32 0.03125, %v735_v39  ;;  %v809_v39 = vpop.xlane.xlu1 %808 }
 0x1e0   :  { %1585 = vmatpush3.msra.mxu1 %v976_v37  ;;  %v883_v37 = vadd.f32 1e-05, %v851_v19  ;;  %1695 = vrsqrt.f32 %v884_v31  ;;  %v826_v34 = vmul.f32 0.03125, %v809_v39  ;;  %v863_v31 = vsub.f32 %v1981_v47, %v2165_v62 }
 0x1e1   :  { %1586 = vmatprep.subr.mxu1 %v975_v48  ;;  %v837_v28 = vmul.f32 %v2197_v10, %v2197_v10 }
 0x1e2   :  { %1587 = vmatpush3.msra.mxu1 %v975_v48  ;;  %v799_v6 = vpop.xlane.xlu0 %798  ;;  %v1684_v48 = vpop.eup %1683  ;;  %1697 = vrsqrt.f32 %v883_v37  ;;  %v966_v37 = vld [vmem:[#allocation8 + $0x10] sm:$0xff] }
 0x1e3   :  { %1588 = vmatprep.subr.mxu1 %v974_v8  ;;  %v821_v29 = vmul.f32 0.03125, %v799_v6  ;;  %v1686_v0 = vpop.eup %1685  ;;  %v886_v6 = vadd.f32 1e-05, %v854_v59 }
 0x1e4   :  { %1589 = vmatpush3.msra.mxu1 %v974_v8  ;;  %v969_v8 = vld [vmem:[#allocation8 + $0x28] sm:$0xff]  ;;  %v1688_v23 = vpop.eup %1687 }
 0x1e5   :  { %1590 = vmatprep.subr.mxu1 %v973_v15  ;;  %v853_v50 = vsub.f32 %v821_v29, %v837_v28  ;;  %v909_v29 = vmul.f32 %v1684_v48, %v861_v60  ;;  %v910_v28 = vmul.f32 %v1686_v0, %v862_v63  ;;  %v1690_v44 = vpop.eup %1689  ;;  %v866_v48 = vsub.f32 %v1978_v46, %v2168_v7  ;;  %v964_v63 = vld [vmem:[#allocation8] sm:$0xff] }
 0x1e6   :  { %1591 = vmatpush3.msra.mxu1 %v973_v15  ;;  %v739_v32 = vpop.xlane.xlu0 %738  ;;  %v856_v15 = vsub.f32 %v824_v35, %v840_v12  ;;  %v911_v12 = vmul.f32 %v1688_v23, %v863_v31 }
 0x1e7   :  { %1592 = vmatprep.subr.mxu1 %v972_v11  ;;  %v2206_v22 = vmul.f32 0.03125, %v739_v32  ;;  %v885_v9 = vadd.f32 1e-05, %v853_v50  ;;  %v965_v50 = vld [vmem:[#allocation8 + $0x8] sm:$0xff]  ;;  %v929_v59 = vmul.f32 %v2151_v45, %v909_v29  ;;  %v930_v62 = vmul.f32 %v2151_v45, %v910_v28 }
 0x1e8   :  { %1593 = vmatpush3.msra.mxu1 %v972_v11  ;;  %v888_v32 = vadd.f32 1e-05, %v856_v15  ;;  %v931_v0 = vmul.f32 %v2151_v45, %v911_v12 }
 0x1e9   :  { %1594 = vmatprep.subr.mxu1 %v971_v33  ;;  %v839_v18 = vmul.f32 %v2206_v22, %v2206_v22  ;;  %1699 = vrsqrt.f32 %v885_v9  ;;  %v950_v7 = vadd.f32 %v2161_v56, %v930_v62 }
 0x1ea   :  { %1595 = vmatpush3.msra.mxu1 %v971_v33  ;;  %v803_v1 = vpop.xlane.xlu0 %802  ;;  %1701 = vrsqrt.f32 %v886_v6  ;;  %v858_v33 = vsub.f32 %v826_v34, %v842_v38  ;;  %v1692_v35 = vpop.eup %1691 }
 0x1eb   :  { %1596 = vmatprep.subr.mxu1 %v970_v57  ;;  %v823_v25 = vmul.f32 0.03125, %v803_v1  ;;  %v1694_v39 = vpop.eup %1693  ;;  %v912_v1 = vmul.f32 %v1690_v44, %v864_v16 }
 0x1ec   :  { %1597 = vmatpush3.msra.mxu1 %v970_v57  ;;  %v890_v60 = vadd.f32 1e-05, %v858_v33 }
 0x1ed   :  { %v855_v42 = vsub.f32 %v823_v25, %v839_v18  ;;  %1598 = vmatprep.subr.mxu1 %v969_v8  ;;  %v949_v25 = vadd.f32 %v2161_v56, %v929_v59  ;;  %v1696_v6 = vpop.eup %1695 }
 0x1ee   :  { %1599 = vmatpush3.msra.mxu1 %v969_v8  ;;  %v743_v19 = vpop.xlane.xlu0 %742  ;;  %v865_v8 = vsub.f32 %v2054_v20, %v2178_v13  ;;  %v868_v20 = vsub.f32 %v1986_v49, %v2183_v26  ;;  %v932_v13 = vmul.f32 %v2151_v45, %v912_v1 }
 0x1ef   :  { %v887_v17 = vadd.f32 1e-05, %v855_v42  ;;  %1600 = vmatprep.subr.mxu1 %v968_v41  ;;  %v2222_v11 = vmul.f32 0.03125, %v743_v19  ;;  %v1698_v34 = vpop.eup %1697  ;;  %v867_v42 = vsub.f32 %v2066_v24, %v2188_v52  ;;  %v951_v19 = vadd.f32 %v2161_v56, %v931_v0 }
 0x1f0   :  { %1601 = vmatpush3.msra.mxu1 %v968_v41  ;;  %v913_v38 = vmul.f32 %v1694_v39, %v865_v8  ;;  %v914_v41 = vmul.f32 %v1692_v35, %v866_v48  ;;  %v952_v28 = vadd.f32 %v2161_v56, %v932_v13  ;;  %v916_v52 = vmul.f32 %v1696_v6, %v868_v20  ;;  %v505_v13 = vld [vmem:[#allocation5 + $0x10] sm:$0xff] }
 0x1f1   :  { %1602 = vmatprep.subr.mxu1 %v967_v21  ;;  %1703 = vrsqrt.f32 %v887_v17  ;;  %v841_v57 = vmul.f32 %v2222_v11, %v2222_v11  ;;  %v915_v26 = vmul.f32 %v1698_v34, %v867_v42  ;;  %v870_v17 = vsub.f32 %v1991_v51, %v2193_v3  ;;  %1570 = vmatpush3.msra.mxu0 %v505_v13  ;;  %v593_v13 = vld [vmem:[%s2418_s4] sm:$0xff]  ;;  %s1865_s4 = smov [#allocation10]  }
 0x1f2   :  { %1603 = vmatpush3.msra.mxu1 %v967_v21  ;;  %v807_v61 = vpop.xlane.xlu0 %806  ;;  %1705 = vrsqrt.f32 %v888_v32  ;;  %v933_v49 = vmul.f32 %v2151_v45, %v913_v38  ;;  %v934_v24 = vmul.f32 %v2151_v45, %v914_v41  ;;  %v869_v32 = vsub.f32 %v2087_v30, %v2197_v10  ;;  %1571 = vmatprep.subr.mxu0 %v1862_v58  ;;  %s1304_s28 = sshll.u32 %s1865_s4, 4  ;;  %s1305_s28 = int_to_ptr.vmem [resolvable:$true] %s1304_s28 }
 0x1f3   :  { %1604 = vmatprep.subr.mxu1 %v966_v37  ;;  %v825_v47 = vmul.f32 0.03125, %v807_v61  ;;  %1707 = vrsqrt.f32 %v890_v60  ;;  %v935_v61 = vmul.f32 %v2151_v45, %v915_v26  ;;  %v872_v51 = vsub.f32 %v1996_v53, %v2202_v27  ;;  %s1828_s5 = scalar_lea.vmem %s1305_s28, 1024  ;;  %p1833_p7 = scmp.lt.s32.totalorder %s1305_s28, %s1305_s28 }
 0x1f4   :  { %1605 = vmatpush3.msra.mxu1 %v966_v37  ;;  %v953_v44 = vadd.f32 %v2161_v56, %v933_v49  ;;  %v954_v3 = vadd.f32 %v2161_v56, %v934_v24  ;;  %v936_v12 = vmul.f32 %v2151_v45, %v916_v52  ;;  %v871_v30 = vsub.f32 %v2111_v36, %v2206_v22  ;;  %p1829_p6 = scmp.ne.s32.totalorder %s1305_s28, %s1828_s5  ;;  %p1834_p8 = scmp.lt.s32.totalorder %s1828_s5, %s1828_s5 }
 0x1f5   :  { %v857_v9 = vsub.f32 %v825_v47, %v841_v57  ;;  %1606 = vmatprep.subr.mxu1 %v965_v50  ;;  %v955_v10 = vadd.f32 %v2161_v56, %v935_v61  ;;  %v874_v53 = vsub.f32 %v2001_v55, %v2210_v54  ;;  %v873_v36 = vsub.f32 %v2116_v40, %v2222_v11 }
 0x1f6   :  { %1607 = vmatpush3.msra.mxu1 %v965_v50  ;;  %v747_v18 = vpop.xlane.xlu0 %746  ;;  %v1700_v23 = vpop.eup %1699  ;;  %v956_v27 = vadd.f32 %v2161_v56, %v936_v12  ;;  %v430_v41 = vsub.s32 1, %v2036_v2  ;;  %p1835_p9 = por %p1834_p8, %p1833_p7 }
 0x1f7   :  { %v889_v15 = vadd.f32 1e-05, %v857_v9  ;;  %1608 = vmatprep.subr.mxu1 %v964_v63  ;;  %v2236_v46 = vmul.f32 0.03125, %v747_v18  ;;  %v1702_v31 = vpop.eup %1701  ;;  %v917_v50 = vmul.f32 %v1700_v23, %v869_v32 }
 0x1f8   :  { %1609 = vmatpush3.msra.mxu1 %v964_v63  ;;  %v918_v35 = vmul.f32 %v1702_v31, %v870_v17  ;;  %p1836_p10 = pnand %p1835_p9, %p1829_p6 }
 0x1f9   :  { %1709 = vrsqrt.f32 %v889_v15  ;;  %1611 = vmatmul.mubr.f32.vlgmr.msra.gmra.mxu1 %v949_v25  ;;  %v843_v21 = vmul.f32 %v2236_v46, %v2236_v46  ;;  %v937_v47 = vmul.f32 %v2151_v45, %v917_v50  ;;  %v875_v0 = vsub.f32 %v2121_v43, %v2236_v46  ;;  %v504_v43 = vld [vmem:[#allocation5 + $0x8] sm:$0xff]  ;;  %v503_v46 = vld [vmem:[#allocation5] sm:$0xff] }
 0x1fa   :  { %1613 = vmatprep.mubr.f32.mxu1 %v950_v7  ;;  %v811_v16 = vpop.xlane.xlu0 %810  ;;  %v938_v39 = vmul.f32 %v2151_v45, %v918_v35  ;;  %1572 = vmatpush3.msra.mxu0 %v504_v43 }
 0x1fb   :  { %v827_v29 = vmul.f32 0.03125, %v811_v16  ;;  %v957_v63 = vadd.f32 %v2161_v56, %v937_v47  ;;  %1573 = vmatprep.subr.mxu0 %v1862_v58 }
 0x1fc   :  { %v958_v9 = vadd.f32 %v2161_v56, %v938_v39  ;;  %1574 = vmatpush3.msra.mxu0 %v503_v46 }
 0x1fd   :  { %v859_v33 = vsub.f32 %v827_v29, %v843_v21  ;;  %1614 = vmatmul.mubr.f32.gmra.mxu1 %v951_v19  ;;  %1634 = vmatprep.subr.mxu0 %v1862_v58 }
 0x1fe   :  { %1616 = vmatprep.mubr.f32.mxu1 %v952_v28  ;;  %v1704_v59 = vpop.eup %1703 }
 0x1ff   :  { %v891_v37 = vadd.f32 1e-05, %v859_v33  ;;  %v1706_v57 = vpop.eup %1705  ;;  %v919_v62 = vmul.f32 %v1704_v59, %v871_v30 }
 0x200   :  { %v920_v48 = vmul.f32 %v1706_v57, %v872_v51  ;;  %v1708_v60 = vpop.eup %1707 }
 0x201   :  { %1711 = vrsqrt.f32 %v891_v37  ;;  %1617 = vmatmul.mubr.f32.gmra.mxu1 %v953_v44  ;;  %v939_v1 = vmul.f32 %v2151_v45, %v919_v62  ;;  %v922_v54 = vmul.f32 %v1708_v60, %v874_v53 }
 0x202   :  { %1619 = vmatprep.mubr.f32.mxu1 %v954_v3  ;;  %v940_v55 = vmul.f32 %v2151_v45, %v920_v48 }
 0x203   :  { %v959_v18 = vadd.f32 %v2161_v56, %v939_v1  ;;  %v942_v11 = vmul.f32 %v2151_v45, %v922_v54  ;;  %v521_v1 = vsub.s32 2, %v2036_v2 }
 0x204   :  { %v960_v40 = vadd.f32 %v2161_v56, %v940_v55 }
 0x205   :  { %1620 = vmatmul.mubr.f32.gmra.mxu1 %v955_v10  ;;  %v962_v38 = vadd.f32 %v2161_v56, %v942_v11 }
 0x206   :  { %v1710_v22 = vpop.eup %1709  ;;  %1622 = vmatprep.mubr.f32.mxu1 %v956_v27 }
 0x207   :  { %v921_v8 = vmul.f32 %v1710_v22, %v873_v36  ;;  %v1864_v22 = vmov 1966171168  }
 0x209   :  { %1623 = vmatmul.mubr.f32.gmra.mxu1 %v957_v63  ;;  %v941_v25 = vmul.f32 %v2151_v45, %v921_v8  ;;  %v597_v63 = vunpack.c.l.s4 %v1864_v22 }
 0x20a   :  { %1625 = vmatprep.mubr.f32.mxu1 %v958_v9  ;;  %v522_v9 = vrot.slane %v2044_v5, %v521_v1 }
 0x20b   :  { %v961_v15 = vadd.f32 %v2161_v56, %v941_v25  ;;  %v598_v8 = vunpack.c.0.s8 %v597_v63 }
 0x20d   :  { %1626 = vmatmul.mubr.f32.gmra.mxu1 %v959_v18  ;;  %v601_v55 = vsub.s32 %v598_v8, %v2036_v2 }
 0x20e   :  { %v1712_v6 = vpop.eup %1711  ;;  %1628 = vmatprep.mubr.f32.mxu1 %v960_v40 }
 0x20f   :  { %v923_v7 = vmul.f32 %v1712_v6, %v875_v0 }
 0x211   :  { %1629 = vmatmul.mubr.f32.gmra.mxu1 %v961_v15  ;;  %v943_v34 = vmul.f32 %v2151_v45, %v923_v7  ;;  %v431_v45 = vrot.slane %v2044_v5, %v430_v41 }
 0x212   :  { %1631 = vmatprep.mubr.f32.mxu1 %v962_v38 }
 0x213   :  { %v963_v20 = vadd.f32 %v2161_v56, %v943_v34 }
 0x215   :  { %1632 = vmatmul.mubr.f32.gmra.mxu1 %v963_v20 }
 0x299   :  { %v498_v42 = vpop.f32.mrf.mxu1 }
 0x29a   :  { %v499_v16 = vadd.f32 %v498_v42, %v431_v45 }
 0x29b   :  { %v1542_v56 = vpop.f32.mrf.mxu1 }
 0x29c   :  { %v502_v19 = vmax.f32 %v499_v16, 0.0 }
 0x29e   :  { %1576 = vmatmul.mubr.f32.vlgmr.msra.gmra.mxu0 %v502_v19 }
 0x29f   :  { %1666 = vmatprep.mubr.msk.f32.mxu0 %vm1863_vm0, %v1862_v58 }
 0x2b9   :  { %v2291_v21 = vpop.f32.mrf.mxu1 }
 0x2ba   :  { %v1126_v60 = vmul.f32 %v2291_v21, %v2291_v21 }
 0x2bb   :  { %v2293_v29 = vpop.f32.mrf.mxu1 }
 0x2bc   :  { %v1125_v36 = vmul.f32 %v2293_v29, %v2293_v29 }
 0x2bd   :  { %v2295_v49 = vpop.f32.mrf.mxu1 }
 0x2be   :  { %v1128_v39 = vmul.f32 %v2295_v49, %v2295_v49 }
 0x2bf   :  { %v2297_v26 = vpop.f32.mrf.mxu1 }
 0x2c0   :  { %v1127_v48 = vmul.f32 %v2297_v26, %v2297_v26 }
 0x2c1   :  { %v2299_v23 = vpop.f32.mrf.mxu1 }
 0x2c2   :  { %v1130_v53 = vmul.f32 %v2299_v23, %v2299_v23 }
 0x2c3   :  { %v2301_v17 = vpop.f32.mrf.mxu1 }
 0x2c4   :  { %v1129_v27 = vmul.f32 %v2301_v17, %v2301_v17 }
 0x2c5   :  { %v2303_v28 = vpop.f32.mrf.mxu1 }
 0x2c6   :  { %v1132_v47 = vmul.f32 %v2303_v28, %v2303_v28 }
 0x2c7   :  { %v2305_v24 = vpop.f32.mrf.mxu1 }
 0x2c8   :  { %v1131_v62 = vmul.f32 %v2305_v24, %v2305_v24 }
 0x2c9   :  { %v2307_v52 = vpop.f32.mrf.mxu1 }
 0x2ca   :  { %v1134_v30 = vmul.f32 %v2307_v52, %v2307_v52 }
 0x2cb   :  { %v2309_v31 = vpop.f32.mrf.mxu1 }
 0x2cc   :  { %v1133_v10 = vmul.f32 %v2309_v31, %v2309_v31 }
 0x2cd   :  { %v2311_v32 = vpop.f32.mrf.mxu1 }
 0x2ce   :  { %v1136_v35 = vmul.f32 %v2311_v32, %v2311_v32 }
 0x2cf   :  { %v2313_v33 = vpop.f32.mrf.mxu1 }
 0x2d0   :  { %v1135_v57 = vmul.f32 %v2313_v33, %v2313_v33 }
 0x2d1   :  { %v2315_v37 = vpop.f32.mrf.mxu1 }
 0x2d2   :  { %v1138_v3 = vmul.f32 %v2315_v37, %v2315_v37 }
 0x2d3   :  { %v2317_v44 = vpop.f32.mrf.mxu1 }
 0x2d4   :  { %v1137_v12 = vmul.f32 %v2317_v44, %v2317_v44 }
 0x2d5   :  { %v2319_v61 = vpop.f32.mrf.mxu1 }
 0x2d6   :  { %v1140_v50 = vmul.f32 %v2319_v61, %v2319_v61 }
 0x2d7   :  { %v2323_v59 = vpop.f32.mrf.mxu1 }
 0x2d8   :  { %v1139_v51 = vmul.f32 %v2323_v59, %v2323_v59  ;;  %1171 = vadd.xlane.f32.xlu1 %v1140_v50 }
 0x2da   :  { %1169 = vadd.xlane.f32.xlu0 %v1139_v51 }
 0x2dc   :  { %1167 = vadd.xlane.f32.xlu1 %v1138_v3 }
 0x2de   :  { %1165 = vadd.xlane.f32.xlu0 %v1137_v12 }
 0x2e0   :  { %1163 = vadd.xlane.f32.xlu1 %v1136_v35 }
 0x2e2   :  { %1161 = vadd.xlane.f32.xlu0 %v1135_v57 }
 0x2e4   :  { %1159 = vadd.xlane.f32.xlu1 %v1134_v30 }
 0x2e6   :  { %1157 = vadd.xlane.f32.xlu0 %v1133_v10 }
 0x2e8   :  { %1155 = vadd.xlane.f32.xlu1 %v1132_v47 }
 0x2ea   :  { %1153 = vadd.xlane.f32.xlu0 %v1131_v62 }
 0x2ec   :  { %1151 = vadd.xlane.f32.xlu1 %v1130_v53 }
 0x2ee   :  { %1149 = vadd.xlane.f32.xlu0 %v1129_v27 }
 0x2f0   :  { %1147 = vadd.xlane.f32.xlu1 %v1128_v39 }
 0x2f2   :  { %1145 = vadd.xlane.f32.xlu0 %v1127_v48 }
 0x2f4   :  { %1143 = vadd.xlane.f32.xlu1 %v1126_v60 }
 0x2f6   :  { %1141 = vadd.xlane.f32.xlu0 %v1125_v36 }
 0x35e   :  { %v589_v54 = vpop.f32.mrf.mxu0 }
 0x35f   :  { %v590_v18 = vadd.f32 %v589_v54, %v522_v9 }
 0x360   :  { %v1577_v25 = vpop.f32.mrf.mxu0 }
 0x361   :  { %v595_v40 = vcombine.high %v590_v18, %v590_v18  ;;  %v602_v11 = vrot.slane %v590_v18, %v601_v55  ;;  %v1172_v0 = vpop.xlane.xlu1 %1171 }
 0x362   :  { %v1188_v6 = vadd.f32 1e-12, %v1172_v0 }
 0x363   :  { %v609_v15 = vrot.slane %v595_v40, %v601_v55  ;;  %v610_v7 = vcombine.high %v602_v11, %v602_v11  ;;  %v618_v38 = vrot.slane %v602_v11, %v601_v55  ;;  %v1170_v34 = vpop.xlane.xlu0 %1169 }
 0x364   :  { %1713 = vrsqrt.f32 %v1188_v6  ;;  %v1187_v20 = vadd.f32 1e-12, %v1170_v34 }
 0x365   :  { %v611_v5 = vcombine.high %v609_v15, %v609_v15  ;;  %v625_v43 = vrot.slane %v609_v15, %v601_v55  ;;  %v632_v46 = vrot.slane %v610_v7, %v601_v55  ;;  %v640_v41 = vcombine.high %v618_v38, %v618_v38  ;;  %v1168_v45 = vpop.xlane.xlu1 %1167 }
 0x366   :  { %v647_v42 = vrot.slane %v618_v38, %v2039_v4  ;;  %1715 = vrsqrt.f32 %v1187_v20  ;;  %v1186_v16 = vadd.f32 1e-12, %v1168_v45 }
 0x367   :  { %v639_v56 = vrot.slane %v611_v5, %v601_v55  ;;  %v641_v19 = vcombine.high %v625_v43, %v625_v43  ;;  %v642_v50 = vcombine.high %v632_v46, %v632_v46  ;;  %v651_v51 = vrot.slane %v632_v46, %v2039_v4  ;;  %v1166_v3 = vpop.xlane.xlu0 %1165 }
 0x368   :  { %v655_v12 = vrot.slane %v640_v41, %v2039_v4  ;;  %v663_v35 = vrot.slane %v625_v43, %v2039_v4  ;;  %v684_v57 = vadd.f32 %v647_v42, %v593_v13  ;;  %1717 = vrsqrt.f32 %v1186_v16 }
 0x369   :  { %v643_v30 = vcombine.high %v639_v56, %v639_v56  ;;  %v659_v10 = vrot.slane %v642_v50, %v2039_v4  ;;  %v667_v47 = vrot.slane %v639_v56, %v2039_v4  ;;  %v671_v62 = vrot.slane %v641_v19, %v2039_v4  ;;  %v1164_v1 = vpop.xlane.xlu1 %1163 }
 0x36a   :  { %v685_v53 = vadd.f32 %v651_v51, %v593_v13  ;;  %v686_v27 = vadd.f32 %v655_v12, %v593_v13  ;;  %v688_v39 = vadd.f32 %v663_v35, %v593_v13  ;;  %692 = vst [vmem:[#allocation10] sm:$0xff] %v684_v57  ;;  %v1185_v48 = vadd.f32 1e-12, %v1166_v3 }
 0x36b   :  { %v675_v60 = vrot.slane %v643_v30, %v2039_v4  ;;  %v687_v36 = vadd.f32 %v659_v10, %v593_v13  ;;  %v689_v22 = vadd.f32 %v667_v47, %v593_v13  ;;  %v690_v63 = vadd.f32 %v671_v62, %v593_v13  ;;  %v1162_v55 = vpop.xlane.xlu0 %1161 }
 0x36c   :  { %693 = vst [vmem:[#allocation10 + $0x8] sm:$0xff] %v685_v53  ;;  %694 = vst [vmem:[#allocation10 + $0x10] sm:$0xff] %v686_v27  ;;  %1719 = vrsqrt.f32 %v1185_v48  ;;  %v1184_v9 = vadd.f32 1e-12, %v1164_v1  ;;  %v1183_v18 = vadd.f32 1e-12, %v1162_v55 }
 0x36d   :  { %696 = vst [vmem:[#allocation10 + $0x20] sm:$0xff] %v688_v39  ;;  %v691_v8 = vadd.f32 %v675_v60, %v593_v13  ;;  %695 = vst [vmem:[#allocation10 + $0x18] sm:$0xff] %v687_v36  ;;  %v1160_v40 = vpop.xlane.xlu1 %1159 }
 0x36e   :  { %697 = vst [vmem:[#allocation10 + $0x28] sm:$0xff] %v689_v22  ;;  %698 = vst [vmem:[#allocation10 + $0x30] sm:$0xff] %v690_v63  ;;  %1721 = vrsqrt.f32 %v1184_v9  ;;  %v1182_v0 = vadd.f32 1e-12, %v1160_v40 }
 0x36f   :  { %699 = vst [vmem:[#allocation10 + $0x38] sm:$0xff] %v691_v8  ;;  %1723 = vrsqrt.f32 %v1183_v18  ;;  %v1158_v15 = vpop.xlane.xlu0 %1157 }
 0x370   :  { %1725 = vrsqrt.f32 %v1182_v0  ;;  %v1181_v7 = vadd.f32 1e-12, %v1158_v15 }
 0x371   :  { %v1714_v54 = vpop.eup %1713 }
 0x372   :  { %v1220_v4 = vmul.f32 %v1714_v54, %v2319_v61  ;;  %v1156_v61 = vpop.xlane.xlu1 %1155  ;;  %1727 = vrsqrt.f32 %v1181_v7 }
 0x373   :  { %v1716_v25 = vpop.eup %1715  ;;  %v1180_v20 = vadd.f32 1e-12, %v1156_v61  ;;  %v1154_v43 = vpop.xlane.xlu0 %1153 }
 0x374   :  { %1635 = vmatpush3.xpose.msra.mxu0 %v1220_v4  ;;  %v1219_v6 = vmul.f32 %v1716_v25, %v2323_v59  ;;  %v1179_v59 = vadd.f32 1e-12, %v1154_v43 }
 0x375   :  { %v1718_v11 = vpop.eup %1717  ;;  %1636 = vmatprep.subr.mxu0 %v1862_v58  ;;  %1729 = vrsqrt.f32 %v1180_v20 }
 0x376   :  { %v1218_v38 = vmul.f32 %v1718_v11, %v2315_v37  ;;  %v1152_v37 = vpop.xlane.xlu1 %1151  ;;  %1731 = vrsqrt.f32 %v1179_v59 }
 0x377   :  { %v1178_v45 = vadd.f32 1e-12, %v1152_v37 }
 0x378   :  { %1637 = vmatpush3.xpose.msra.mxu0 %v1219_v6 }
 0x379   :  { %1638 = vmatprep.subr.mxu0 %v1862_v58  ;;  %v1720_v34 = vpop.eup %1719  ;;  %1733 = vrsqrt.f32 %v1178_v45 }
 0x37a   :  { %v1217_v13 = vmul.f32 %v1720_v34, %v2317_v44  ;;  %v1150_v44 = vpop.xlane.xlu0 %1149 }
 0x37b   :  { %v1722_v5 = vpop.eup %1721  ;;  %v1177_v56 = vadd.f32 1e-12, %v1150_v44 }
 0x37c   :  { %1639 = vmatpush3.xpose.msra.mxu0 %v1218_v38  ;;  %v1216_v46 = vmul.f32 %v1722_v5, %v2311_v32  ;;  %v1724_v41 = vpop.eup %1723  ;;  %v1148_v32 = vpop.xlane.xlu1 %1147 }
 0x37d   :  { %1640 = vmatprep.subr.mxu0 %v1862_v58  ;;  %v1215_v42 = vmul.f32 %v1724_v41, %v2313_v33  ;;  %v1726_v16 = vpop.eup %1725  ;;  %1735 = vrsqrt.f32 %v1177_v56  ;;  %v1176_v51 = vadd.f32 1e-12, %v1148_v32 }
 0x37e   :  { %v1214_v19 = vmul.f32 %v1726_v16, %v2307_v52  ;;  %v1146_v33 = vpop.xlane.xlu0 %1145 }
 0x37f   :  { %v1728_v50 = vpop.eup %1727  ;;  %1737 = vrsqrt.f32 %v1176_v51  ;;  %v1175_v35 = vadd.f32 1e-12, %v1146_v33 }
 0x380   :  { %1641 = vmatpush3.xpose.msra.mxu0 %v1217_v13  ;;  %v1213_v3 = vmul.f32 %v1728_v50, %v2309_v31  ;;  %v1144_v52 = vpop.xlane.xlu1 %1143 }
 0x381   :  { %1642 = vmatprep.subr.mxu0 %v1862_v58  ;;  %1739 = vrsqrt.f32 %v1175_v35  ;;  %v1174_v10 = vadd.f32 1e-12, %v1144_v52 }
 0x382   :  { %v1730_v12 = vpop.eup %1729  ;;  %v1142_v31 = vpop.xlane.xlu0 %1141 }
 0x383   :  { %v1212_v57 = vmul.f32 %v1730_v12, %v2303_v28  ;;  %v1732_v30 = vpop.eup %1731  ;;  %1741 = vrsqrt.f32 %v1174_v10  ;;  %v1173_v53 = vadd.f32 1e-12, %v1142_v31 }
 0x384   :  { %1643 = vmatpush3.xpose.msra.mxu0 %v1216_v46  ;;  %v1211_v47 = vmul.f32 %v1732_v30, %v2305_v24 }
 0x385   :  { %1644 = vmatprep.subr.mxu0 %v1862_v58  ;;  %1743 = vrsqrt.f32 %v1173_v53 }
 0x386   :  { %v1734_v62 = vpop.eup %1733 }
 0x387   :  { %v1210_v27 = vmul.f32 %v1734_v62, %v2299_v23 }
 0x388   :  { %1645 = vmatpush3.xpose.msra.mxu0 %v1215_v42 }
 0x389   :  { %1646 = vmatprep.subr.mxu0 %v1862_v58 }
 0x38a   :  { %v1736_v39 = vpop.eup %1735 }
 0x38b   :  { %v1209_v28 = vmul.f32 %v1736_v39, %v2301_v17 }
 0x38c   :  { %1647 = vmatpush3.xpose.msra.mxu0 %v1214_v19  ;;  %v1738_v48 = vpop.eup %1737 }
 0x38d   :  { %1648 = vmatprep.subr.mxu0 %v1862_v58  ;;  %v1208_v24 = vmul.f32 %v1738_v48, %v2295_v49 }
 0x38e   :  { %v1740_v60 = vpop.eup %1739 }
 0x38f   :  { %v1207_v36 = vmul.f32 %v1740_v60, %v2297_v26 }
 0x390   :  { %1649 = vmatpush3.xpose.msra.mxu0 %v1213_v3  ;;  %v1742_v23 = vpop.eup %1741 }
 0x391   :  { %1650 = vmatprep.subr.mxu0 %v1862_v58  ;;  %v1206_v22 = vmul.f32 %v1742_v23, %v2291_v21 }
 0x392   :  { %v1744_v63 = vpop.eup %1743 }
 0x393   :  { %v1205_v17 = vmul.f32 %v1744_v63, %v2293_v29 }
 0x394   :  { %1651 = vmatpush3.xpose.msra.mxu0 %v1212_v57 }
 0x395   :  { %1652 = vmatprep.subr.mxu0 %v1862_v58 }
 0x398   :  { %1653 = vmatpush3.xpose.msra.mxu0 %v1211_v47 }
 0x399   :  { %1654 = vmatprep.subr.mxu0 %v1862_v58 }
 0x39c   :  { %1655 = vmatpush3.xpose.msra.mxu0 %v1210_v27 }
 0x39d   :  { %1656 = vmatprep.subr.mxu0 %v1862_v58 }
 0x3a0   :  { %1657 = vmatpush3.xpose.msra.mxu0 %v1209_v28 }
 0x3a1   :  { %1658 = vmatprep.subr.mxu0 %v1862_v58 }
 0x3a4   :  { %1659 = vmatpush3.xpose.msra.mxu0 %v1208_v24 }
 0x3a5   :  { %1660 = vmatprep.subr.mxu0 %v1862_v58 }
 0x3a8   :  { %1661 = vmatpush3.xpose.msra.mxu0 %v1207_v36 }
 0x3a9   :  { %1662 = vmatprep.subr.mxu0 %v1862_v58 }
 0x3ac   :  { %1663 = vmatpush3.xpose.msra.mxu0 %v1206_v22 }
 0x3ad   :  { %1664 = vmatprep.subr.mxu0 %v1862_v58 }
 0x3b0   :  { %1665 = vmatpush3.xpose.msra.mxu0 %v1205_v17 }
 0x3b3   :  { %1667 = vmatmul.mubr.f32.vlgmr.msra.gmra.mxu0 %v2171_v14 }
 0x3b4   :  { %1839 = shalt.err (!%p1836_p10)
}
 0x3b5   :  { %1310 = dma.vmem_to_hbm [thread:$0]  %s1305_s28, 1024, %s2423_s9, [#allocation4], %s1858_s14, %s1858_s14, %s1859_s15   ;;  %v1293_v21 = vsub.s32 5, %v2036_v2 }
 0x3b6   :  { %v1747_v58 = vld [vmem:[%s2421_s7] sm:$0xff] }
 0x3b7   :  { %v88_v14 = vmul.f32 1.442695, %v1747_v58 }
 0x3b9   :  { %1745 = vpow2.f32 %v88_v14 }
 0x3c6   :  { %v1746_v29 = vpop.eup %1745 }
 0x3c7   :  { %v1294_v49 = vrot.slane %v1746_v29, %v1293_v21 }
 0x473   :  { %v1287_v26 = vpop.f32.mrf.mxu0 }
 0x474   :  { %v1295_v1 = vmul.f32 %v1294_v49, %v1287_v26 }
 0x475   :  { %v1668_v8 = vpop.f32.mrf.mxu0 }
 0x476   :  { %1296 = vst [vmem:[%s2422_s8] sm:$0xff] %v1295_v1 }
 0x477   :  { %1854 = dma.done.wait [#allocation4], 1024  }
 0x478   :  { %1855 = vsyncadd [#allocation4], 4294966272 }
 0x479   :  { %1316 = vsyncpa [#allocation3], 1 }
 0x47a   :  { %1317 = vsyncpa [#allocation6], 1 }
 0x47b   :  { %1318 = vsyncpa [#allocation9], 1 }
 0x47c   :  { %1319 = vsyncpa [#allocation4], 1 }

</bundles_post_ra>
